<compile_context>
chip_gen: v5e
topology: v5e:2x2
jax: 0.10.0
libtpu: 0.0.40
codegen_flags: <defaults>
</compile_context>

<pallas_src>
import math
import functools

import jax
import jax.numpy as jnp
from jax.experimental import pallas as pl
from jax.experimental.pallas import tpu as pltpu


# ----------------------------- in-kernel helpers -----------------------------

def _layernorm(x, g, b, eps):
    mu = jnp.mean(x, axis=-1, keepdims=True)
    var = jnp.mean((x - mu) ** 2, axis=-1, keepdims=True)
    return (x - mu) * jax.lax.rsqrt(var + eps) * g + b


def _gelu_exact(x):
    # torch.nn.GELU default: exact erf form (computed in f32).
    # TODO(synk): tanh-approx GELU would move the transcendental to the EUP slot
    #             on v5e, but exact erf keeps torch parity.
    return 0.5 * x * (1.0 + jax.lax.erf(x * 0.7071067811865476))


# ------------------------------- Pallas kernels -------------------------------

def vit_encoder_kernel(x_ref, ln1_g_ref, ln1_b_ref, wqkv_ref, bqkv_ref,
                       wo_ref, bo_ref, ln2_g_ref, ln2_b_ref,
                       w1_ref, b1_ref, w2_ref, b2_ref,
                       lnf_g_ref, lnf_b_ref, o_ref, act_ref,
                       *, n_heads, ln_eps):
    """Whole encoder. Grid = (batch_tiles, layers); activation stays in VMEM
    (act_ref) across the layer axis.  Weights arrive pre-transposed (in, out)
    in bf16 with the softmax scale folded into the Q part of Wqkv/bqkv."""
    layer = pl.program_id(1)
    n_layers = pl.num_programs(1)
    Bt, S, D = x_ref.shape
    M = Bt * S
    hd = D // n_heads
    cdt = wqkv_ref.dtype                                 # bf16 MXU operand dtype

    # --- load the batch tile into the layer-resident activation scratch ---
    @pl.when(layer == 0)
    def _():
        act_ref[...] = x_ref[...].reshape(M, D)

    x = act_ref[...]                                      # (M, D) f32

    # --- ln_1 (f32) -> fused QKV projection (bf16 operands, f32 accumulate) ---
    xn = _layernorm(x, ln1_g_ref[0], ln1_b_ref[0], ln_eps).astype(cdt)
    qkv = jnp.dot(xn, wqkv_ref[...], preferred_element_type=jnp.float32) + bqkv_ref[0]
    qkv_b = qkv.astype(cdt)                               # cast once for the head loop

    # --- per-batch, per-head attention; heads merged in registers (no masked
    #     lane stores), single full-width out-proj afterwards ---
    ctx_rows = []
    for b in range(Bt):                                   # static loops
        qkv_sb = qkv_b[b * S:(b + 1) * S, :]
        heads = []
        for h in range(n_heads):
            lo = h * hd
            qh = qkv_sb[:, lo:lo + hd]
            kh = qkv_sb[:, D + lo:D + lo + hd]
            vh = qkv_sb[:, 2 * D + lo:2 * D + lo + hd]
            # QK^T without materializing a transpose (contract feature dim).
            s = jax.lax.dot_general(qh, kh, (((1,), (1,)), ((), ())),
                                    preferred_element_type=jnp.float32)
            s = s - jnp.max(s, axis=-1, keepdims=True)    # scale folded into Wq
            p = jnp.exp(s)
            p = p * pl.reciprocal(jnp.sum(p, axis=-1, keepdims=True), approx=True)
            heads.append(jnp.dot(p.astype(cdt), vh,
                                 preferred_element_type=jnp.float32))
        ctx_rows.append(heads[0] if n_heads == 1 else jnp.concatenate(heads, axis=-1))
    ctx = (ctx_rows[0] if Bt == 1 else jnp.concatenate(ctx_rows, axis=0)).astype(cdt)

    # --- output projection (single full-width contraction over D) + residual ---
    x = x + jnp.dot(ctx, wo_ref[...], preferred_element_type=jnp.float32) + bo_ref[0]

    # --- ln_2 + MLP (fc -> gelu -> fc) + residual ---
    xn2 = _layernorm(x, ln2_g_ref[0], ln2_b_ref[0], ln_eps).astype(cdt)
    h1 = jnp.dot(xn2, w1_ref[...], preferred_element_type=jnp.float32) + b1_ref[0]
    h1 = _gelu_exact(h1).astype(cdt)
    y = x + jnp.dot(h1, w2_ref[...], preferred_element_type=jnp.float32) + b2_ref[0]

    act_ref[...] = y                                      # carry to next layer

    # --- fused final LayerNorm + output store only on the last layer ---
    @pl.when(layer == n_layers - 1)
    def _():
        yf = _layernorm(y, lnf_g_ref[0], lnf_b_ref[0], ln_eps)
        o_ref[...] = yf.reshape(Bt, S, D).astype(o_ref.dtype)


def final_ln_kernel(x_ref, g_ref, b_ref, o_ref, *, ln_eps):
    # Only used for the degenerate n_layers == 0 case; otherwise fused above.
    o_ref[0] = _layernorm(x_ref[0], g_ref[0], b_ref[0], ln_eps)


# ------------------------------- wrappers -------------------------------

def _vmem_cap_bytes():
    """Per-generation VMEM cap with headroom (compiler scratch, semaphores)."""
    try:
        phys = pltpu.get_tpu_info().vmem_capacity_bytes
        return int(min(max(phys - (12 << 20), 32 << 20), 110 << 20))
    except Exception:
        return 48 << 20                                   # safe on every generation


def _vmem_limit_bytes(Bt, S, D, mlp_d):
    """Rough working-set estimate for the fused encoder kernel."""
    M = Bt * S
    w_layer = 2 * (D * 3 * D + D * D + 2 * D * mlp_d)     # bf16 per-layer weights
    w = 2 * w_layer                                       # double-buffered (layer prefetch)
    xio = 2 * 2 * (4 * Bt * S * D)                        # x in + out blocks, dbl-buffered f32
    act = 4 * M * D                                       # layer-resident activation scratch
    inter = 4 * (2 * M * 3 * D + S * S + M * mlp_d + 6 * M * D)
    est = int(1.4 * (w + xio + act + inter)) + (4 << 20)
    return max(32 << 20, min(est, _vmem_cap_bytes()))


def _choose_block_batch(B, S, D, mlp_d, budget_bytes=32 << 20):
    """Largest Bt dividing B whose f32 intermediates fit the budget, preferring
    an even number of batch tiles so both v7x TensorCores stay fed."""
    cands = [bt for bt in range(1, B + 1) if B % bt == 0]
    fitting = [bt for bt in cands if bt * S * (3 * D + mlp_d + 6 * D) * 4 <= budget_bytes]
    if not fitting:
        return 1
    even_tiles = [bt for bt in fitting if (B // bt) % 2 == 0]
    pool = even_tiles if even_tiles else fitting
    return max(pool)


def vit_encoder(x, kparams, *, n_heads, ln_eps, block_batch=None):
    B, S, D = x.shape
    if kparams.get('wqkv') is None:                       # n_layers == 0
        return final_ln(x, kparams['ln_g'], kparams['ln_b'], ln_eps=ln_eps)

    L = kparams['wqkv'].shape[0]
    mlp_d = kparams['w1'].shape[-1]
    assert D % n_heads == 0 and S % 8 == 0

    Bt = block_batch or _choose_block_batch(B, S, D, mlp_d)
    assert B % Bt == 0
    n_bt = B // Bt

    x_spec = pl.BlockSpec((Bt, S, D), lambda bt, l: (bt, 0, 0))

    def lspec(shape):                                     # per-layer weight, L dim squeezed
        return pl.BlockSpec((None,) + shape, lambda bt, l: (l,) + (0,) * len(shape))

    def cspec(shape):                                     # block-invariant (final LN)
        return pl.BlockSpec(shape, lambda bt, l: (0,) * len(shape))

    in_specs = [
        x_spec,
        lspec((1, D)), lspec((1, D)),                     # ln_1 gamma / beta
        lspec((D, 3 * D)), lspec((1, 3 * D)),             # Wqkv^T (bf16, Q pre-scaled), bqkv
        lspec((D, D)), lspec((1, D)),                     # Wo^T (bf16), bo
        lspec((1, D)), lspec((1, D)),                     # ln_2 gamma / beta
        lspec((D, mlp_d)), lspec((1, mlp_d)),             # W1^T (bf16), b1
        lspec((mlp_d, D)), lspec((1, D)),                 # W2^T (bf16), b2
        cspec((1, D)), cspec((1, D)),                     # final LN gamma / beta
    ]
    args = [x, kparams['ln1_g'], kparams['ln1_b'], kparams['wqkv'], kparams['bqkv'],
            kparams['wo'], kparams['bo'], kparams['ln2_g'], kparams['ln2_b'],
            kparams['w1'], kparams['b1'], kparams['w2'], kparams['b2'],
            kparams['ln_g'], kparams['ln_b']]

    return pl.pallas_call(
        functools.partial(vit_encoder_kernel, n_heads=n_heads, ln_eps=ln_eps),
        out_shape=jax.ShapeDtypeStruct((B, S, D), x.dtype),
        grid=(n_bt, L),
        in_specs=in_specs,
        out_specs=x_spec,
        scratch_shapes=[pltpu.VMEM((Bt * S, D), jnp.float32)],  # layer-resident activation
        compiler_params=pltpu.CompilerParams(
            dimension_semantics=("parallel", "arbitrary"),
            vmem_limit_bytes=_vmem_limit_bytes(Bt, S, D, mlp_d)),
    )(*args)


def final_ln(x, g, b, *, ln_eps):
    B, S, D = x.shape
    x_spec = pl.BlockSpec((1, S, D), lambda bi: (bi, 0, 0))
    v_spec = pl.BlockSpec((1, D), lambda bi: (0, 0))
    return pl.pallas_call(
        functools.partial(final_ln_kernel, ln_eps=ln_eps),
        out_shape=jax.ShapeDtypeStruct((B, S, D), x.dtype),
        grid=(B,),
        in_specs=[x_spec, v_spec, v_spec],
        out_specs=x_spec,
        compiler_params=pltpu.CompilerParams(dimension_semantics=("parallel",)),
    )(x, g, b)


# ------------------------- params (PyTorch convention) -------------------------

def init_params(key, n_layers, hidden_d, n_heads, mlp_d):
    """Canonical f32 params, PyTorch (out_features, in_features) convention."""
    D = hidden_d
    blocks = []
    for _ in range(n_layers):
        keys = jax.random.split(key, 5)
        key = keys[0]
        blocks.append(dict(
            ln1_g=jnp.ones((1, D), jnp.float32),
            ln1_b=jnp.zeros((1, D), jnp.float32),
            wqkv=0.02 * jax.random.normal(keys[1], (3 * D, D), jnp.float32),
            bqkv=jnp.zeros((1, 3 * D), jnp.float32),
            wo=0.02 * jax.random.normal(keys[2], (D, D), jnp.float32),
            bo=jnp.zeros((1, D), jnp.float32),
            ln2_g=jnp.ones((1, D), jnp.float32),
            ln2_b=jnp.zeros((1, D), jnp.float32),
            w1=0.02 * jax.random.normal(keys[3], (mlp_d, D), jnp.float32),
            b1=jnp.zeros((1, mlp_d), jnp.float32),
            w2=0.02 * jax.random.normal(keys[4], (D, mlp_d), jnp.float32),
            b2=jnp.zeros((1, D), jnp.float32),
        ))
    return dict(blocks=blocks,
                ln_g=jnp.ones((1, D), jnp.float32),
                ln_b=jnp.zeros((1, D), jnp.float32))


def prepare_params(params, *, n_heads, compute_dtype=jnp.bfloat16):
    """Host-side layout plumbing: pre-transpose weights to (in, out), cast to
    bf16, fold the 1/sqrt(head_dim) softmax scale into the Q part of Wqkv/bqkv,
    and stack all layers along a leading L axis for the fused kernel."""
    blocks = params['blocks']
    out = dict(ln_g=params['ln_g'], ln_b=params['ln_b'])
    if not blocks:
        out['wqkv'] = None
        return out

    D = blocks[0]['wo'].shape[0]
    hd = D // n_heads
    scale = 1.0 / math.sqrt(hd)
    scale_vec = jnp.concatenate(
        [jnp.full((D,), scale, jnp.float32), jnp.ones((2 * D,), jnp.float32)])

    def stack(key, fn=lambda a: a):
        return jnp.stack([fn(p[key]) for p in blocks], axis=0)

    out.update(
        ln1_g=stack('ln1_g'), ln1_b=stack('ln1_b'),
        wqkv=stack('wqkv', lambda w: (w * scale_vec[:, None]).T.astype(compute_dtype)),
        bqkv=stack('bqkv', lambda b: b * scale_vec[None, :]),
        wo=stack('wo', lambda w: w.T.astype(compute_dtype)), bo=stack('bo'),
        ln2_g=stack('ln2_g'), ln2_b=stack('ln2_b'),
        w1=stack('w1', lambda w: w.T.astype(compute_dtype)), b1=stack('b1'),
        w2=stack('w2', lambda w: w.T.astype(compute_dtype)), b2=stack('b2'),
    )
    return out


# ------------------------------- pure-JAX reference -------------------------------

def ref_encoder(x, params, *, n_heads, ln_eps):
    def ln(x, g, b):
        mu = x.mean(-1, keepdims=True)
        var = ((x - mu) ** 2).mean(-1, keepdims=True)
        return (x - mu) / jnp.sqrt(var + ln_eps) * g[0] + b[0]

    B, S, D = x.shape
    hd = D // n_heads
    for p in params['blocks']:
        xn = ln(x, p['ln1_g'], p['ln1_b'])
        qkv = xn @ p['wqkv'].T + p['bqkv'][0]
        q, k, v = jnp.split(qkv, 3, axis=-1)
        q = q.reshape(B, S, n_heads, hd).transpose(0, 2, 1, 3)
        k = k.reshape(B, S, n_heads, hd).transpose(0, 2, 1, 3)
        v = v.reshape(B, S, n_heads, hd).transpose(0, 2, 1, 3)
        s = jnp.einsum('bhqd,bhkd->bhqk', q, k) / math.sqrt(hd)
        a = jax.nn.softmax(s, axis=-1)
        ctx = jnp.einsum('bhqk,bhkd->bhqd', a, v).transpose(0, 2, 1, 3).reshape(B, S, D)
        x = x + ctx @ p['wo'].T + p['bo'][0]
        xn2 = ln(x, p['ln2_g'], p['ln2_b'])
        h = jax.nn.gelu(xn2 @ p['w1'].T + p['b1'][0], approximate=False)
        x = x + h @ p['w2'].T + p['b2'][0]
    return ln(x, params['ln_g'], params['ln_b'])


# ------------------------------- main -------------------------------

if __name__ == "__main__":
    # Small but lane-friendly shapes: D = 128 (full lane width), S multiple of 8.
    n_layers, hidden_d, n_heads, mlp_d, ln_eps = 2, 128, 4, 256, 1e-6
    B, S = 2, 16

    key = jax.random.PRNGKey(0)
    kx, kp = jax.random.split(key)
    x = jax.random.normal(kx, (B, S, hidden_d), jnp.float32)
    params = init_params(kp, n_layers, hidden_d, n_heads, mlp_d)
    kparams = prepare_params(params, n_heads=n_heads)

    out = jax.block_until_ready(
        vit_encoder(x, kparams, n_heads=n_heads, ln_eps=ln_eps))

    ref = ref_encoder(x, params, n_heads=n_heads, ln_eps=ln_eps)
    assert out.shape == (B, S, hidden_d)
    max_err = float(jnp.max(jnp.abs(out - ref)))
    assert jnp.allclose(out, ref, atol=2e-2, rtol=2e-2), \
        f"mismatch vs pure-JAX reference (max abs err {max_err})"

    print("KERNEL_OK")
</pallas_src>

<mosaic_0001>
module attributes {stable_mosaic.version = 11 : i64} {
  func.func @vit_encoder_kernel(%arg0: i32, %arg1: i32, %arg2: memref<1x16x128xf32, #tpu.memory_space<vmem>>, %arg3: memref<1x1x128xf32, #tpu.memory_space<vmem>>, %arg4: memref<1x1x128xf32, #tpu.memory_space<vmem>>, %arg5: memref<1x128x384xbf16, #tpu.memory_space<vmem>>, %arg6: memref<1x1x384xf32, #tpu.memory_space<vmem>>, %arg7: memref<1x128x128xbf16, #tpu.memory_space<vmem>>, %arg8: memref<1x1x128xf32, #tpu.memory_space<vmem>>, %arg9: memref<1x1x128xf32, #tpu.memory_space<vmem>>, %arg10: memref<1x1x128xf32, #tpu.memory_space<vmem>>, %arg11: memref<1x128x256xbf16, #tpu.memory_space<vmem>>, %arg12: memref<1x1x256xf32, #tpu.memory_space<vmem>>, %arg13: memref<1x256x128xbf16, #tpu.memory_space<vmem>>, %arg14: memref<1x1x128xf32, #tpu.memory_space<vmem>>, %arg15: memref<1x128xf32, #tpu.memory_space<vmem>>, %arg16: memref<1x128xf32, #tpu.memory_space<vmem>>, %arg17: memref<1x16x128xf32, #tpu.memory_space<vmem>>, %arg18: memref<16x128xf32, #tpu.memory_space<vmem>>) attributes {dimension_semantics = [#tpu.dimension_semantics<parallel>, #tpu.dimension_semantics<arbitrary>], iteration_bounds = array<i64: 2, 2>, scalar_prefetch = 0 : i64, scratch_operands = 1 : i64, tpu.core_type = #tpu.core_type<tc>, window_params = [{transform_indices = @transform_0, window_bounds = array<i64: 1, 16, 128>}, {transform_indices = @transform_1, window_bounds = array<i64: 1, 1, 128>}, {transform_indices = @transform_2, window_bounds = array<i64: 1, 1, 128>}, {transform_indices = @transform_3, window_bounds = array<i64: 1, 128, 384>}, {transform_indices = @transform_4, window_bounds = array<i64: 1, 1, 384>}, {transform_indices = @transform_5, window_bounds = array<i64: 1, 128, 128>}, {transform_indices = @transform_6, window_bounds = array<i64: 1, 1, 128>}, {transform_indices = @transform_7, window_bounds = array<i64: 1, 1, 128>}, {transform_indices = @transform_8, window_bounds = array<i64: 1, 1, 128>}, {transform_indices = @transform_9, window_bounds = array<i64: 1, 128, 256>}, {transform_indices = @transform_10, window_bounds = array<i64: 1, 1, 256>}, {transform_indices = @transform_11, window_bounds = array<i64: 1, 256, 128>}, {transform_indices = @transform_12, window_bounds = array<i64: 1, 1, 128>}, {pipeline_mode = #tpu.pipeline_mode<synchronous>, transform_indices = @transform_13, window_bounds = array<i64: 1, 128>}, {pipeline_mode = #tpu.pipeline_mode<synchronous>, transform_indices = @transform_14, window_bounds = array<i64: 1, 128>}, {transform_indices = @transform_15, window_bounds = array<i64: 1, 16, 128>}]} {
    %c0_i32 = arith.constant 0 : i32
    %0 = arith.cmpi eq, %arg1, %c0_i32 : i32
    %1 = arith.extui %0 : i1 to i32
    %c0_i32_0 = arith.constant 0 : i32
    %2 = arith.cmpi ne, %1, %c0_i32_0 : i32
    scf.if %2 {
      %c0_73 = arith.constant 0 : index
      %c0_74 = arith.constant 0 : index
      %c0_75 = arith.constant 0 : index
      %176 = vector.load %arg2[%c0_73, %c0_74, %c0_75] : memref<1x16x128xf32, #tpu.memory_space<vmem>>, vector<1x16x128xf32>
      %177 = vector.shape_cast %176 : vector<1x16x128xf32> to vector<16x128xf32>
      %c0_76 = arith.constant 0 : index
      %c0_77 = arith.constant 0 : index
      %178 = vector.load %arg18[%c0_76, %c0_77] : memref<16x128xf32, #tpu.memory_space<vmem>>, vector<16x128xf32>
      tpu.vector_store %arg18[%c0_76, %c0_77], %177 {strides = array<i32>} : memref<16x128xf32, #tpu.memory_space<vmem>>, vector<16x128xf32>,
    } else {
    }
    %c0 = arith.constant 0 : index
    %c0_1 = arith.constant 0 : index
    %3 = vector.load %arg18[%c0, %c0_1] : memref<16x128xf32, #tpu.memory_space<vmem>>, vector<16x128xf32>
    %c0_2 = arith.constant 0 : index
    %c0_3 = arith.constant 0 : index
    %c0_4 = arith.constant 0 : index
    %4 = vector.load %arg3[%c0_2, %c0_3, %c0_4] : memref<1x1x128xf32, #tpu.memory_space<vmem>>, vector<1x1x128xf32>
    %5 = vector.shape_cast %4 : vector<1x1x128xf32> to vector<128xf32>
    %c0_5 = arith.constant 0 : index
    %c0_6 = arith.constant 0 : index
    %c0_7 = arith.constant 0 : index
    %6 = vector.load %arg4[%c0_5, %c0_6, %c0_7] : memref<1x1x128xf32, #tpu.memory_space<vmem>>, vector<1x1x128xf32>
    %7 = vector.shape_cast %6 : vector<1x1x128xf32> to vector<128xf32>
    %cst = arith.constant dense<0.000000e+00> : vector<16xf32>
    %8 = vector.multi_reduction <add>, %3, %cst [1] : vector<16x128xf32> to vector<16xf32>
    %9 = vector.shape_cast %8 : vector<16xf32> to vector<16x1xf32>
    %cst_8 = arith.constant 1.280000e+02 : f32
    %10 = vector.broadcast %cst_8 : f32 to vector<16x1xf32>
    %11 = arith.divf %9, %10 : vector<16x1xf32>
    %12 = vector.broadcast %11 : vector<16x1xf32> to vector<16x128xf32>
    %13 = arith.subf %3, %12 : vector<16x128xf32>
    %14 = arith.mulf %13, %13 : vector<16x128xf32>
    %cst_9 = arith.constant dense<0.000000e+00> : vector<16xf32>
    %15 = vector.multi_reduction <add>, %14, %cst_9 [1] : vector<16x128xf32> to vector<16xf32>
    %16 = vector.shape_cast %15 : vector<16xf32> to vector<16x1xf32>
    %cst_10 = arith.constant 1.280000e+02 : f32
    %17 = vector.broadcast %cst_10 : f32 to vector<16x1xf32>
    %18 = arith.divf %16, %17 : vector<16x1xf32>
    %19 = vector.broadcast %11 : vector<16x1xf32> to vector<16x128xf32>
    %20 = arith.subf %3, %19 : vector<16x128xf32>
    %cst_11 = arith.constant 9.99999997E-7 : f32
    %21 = vector.broadcast %cst_11 : f32 to vector<16x1xf32>
    %22 = arith.addf %18, %21 : vector<16x1xf32>
    %23 = math.rsqrt %22 : vector<16x1xf32>
    %24 = vector.broadcast %23 : vector<16x1xf32> to vector<16x128xf32>
    %25 = arith.mulf %20, %24 : vector<16x128xf32>
    %26 = vector.shape_cast %5 : vector<128xf32> to vector<1x128xf32>
    %27 = vector.broadcast %26 : vector<1x128xf32> to vector<16x128xf32>
    %28 = arith.mulf %25, %27 : vector<16x128xf32>
    %29 = vector.shape_cast %7 : vector<128xf32> to vector<1x128xf32>
    %30 = vector.broadcast %29 : vector<1x128xf32> to vector<16x128xf32>
    %31 = arith.addf %28, %30 : vector<16x128xf32>
    %32 = arith.truncf %31 : vector<16x128xf32> to vector<16x128xbf16>
    %c0_12 = arith.constant 0 : index
    %c0_13 = arith.constant 0 : index
    %c0_14 = arith.constant 0 : index
    %33 = vector.load %arg5[%c0_12, %c0_13, %c0_14] : memref<1x128x384xbf16, #tpu.memory_space<vmem>>, vector<1x128x384xbf16>
    %34 = vector.shape_cast %33 : vector<1x128x384xbf16> to vector<128x384xbf16>
    %cst_15 = arith.constant dense<0.000000e+00> : vector<16x384xf32>
    %35 = tpu.matmul %32, %34, %cst_15 {dimension_numbers = #tpu.dot_dimension_numbers<[1], [0], [0], [1], [0, 0, 1, 1], [], []>} : vector<16x128xbf16>, vector<128x384xbf16>, vector<16x384xf32> -> vector<16x384xf32>
    %c0_16 = arith.constant 0 : index
    %c0_17 = arith.constant 0 : index
    %c0_18 = arith.constant 0 : index
    %36 = vector.load %arg6[%c0_16, %c0_17, %c0_18] : memref<1x1x384xf32, #tpu.memory_space<vmem>>, vector<1x1x384xf32>
    %37 = vector.shape_cast %36 : vector<1x1x384xf32> to vector<384xf32>
    %38 = vector.shape_cast %37 : vector<384xf32> to vector<1x384xf32>
    %39 = vector.broadcast %38 : vector<1x384xf32> to vector<16x384xf32>
    %40 = arith.addf %35, %39 : vector<16x384xf32>
    %41 = arith.truncf %40 : vector<16x384xf32> to vector<16x384xbf16>
    %42 = vector.extract_strided_slice %41 {offsets = [0, 0], sizes = [16, 32], strides = [1, 1]} : vector<16x384xbf16> to vector<16x32xbf16>
    %43 = vector.extract_strided_slice %41 {offsets = [0, 128], sizes = [16, 32], strides = [1, 1]} : vector<16x384xbf16> to vector<16x32xbf16>
    %44 = vector.extract_strided_slice %41 {offsets = [0, 256], sizes = [16, 32], strides = [1, 1]} : vector<16x384xbf16> to vector<16x32xbf16>
    %cst_19 = arith.constant dense<0.000000e+00> : vector<16x16xf32>
    %45 = tpu.matmul %42, %43, %cst_19 {dimension_numbers = #tpu.dot_dimension_numbers<[1], [1], [0], [0], [0, 0, 1, 0], [], []>} : vector<16x32xbf16>, vector<16x32xbf16>, vector<16x16xf32> -> vector<16x16xf32>
    %cst_20 = arith.constant dense<0xFF800000> : vector<16xf32>
    %46 = vector.multi_reduction <maximumf>, %45, %cst_20 [1] : vector<16x16xf32> to vector<16xf32>
    %47 = vector.shape_cast %46 : vector<16xf32> to vector<16x1xf32>
    %48 = vector.broadcast %47 : vector<16x1xf32> to vector<16x16xf32>
    %49 = arith.subf %45, %48 : vector<16x16xf32>
    %50 = math.exp %49 : vector<16x16xf32>
    %cst_21 = arith.constant dense<0.000000e+00> : vector<16xf32>
    %51 = vector.multi_reduction <add>, %50, %cst_21 [1] : vector<16x16xf32> to vector<16xf32>
    %52 = vector.shape_cast %51 : vector<16xf32> to vector<16x1xf32>
    %53 = tpu.reciprocal %52 {approx = true} : vector<16x1xf32> -> vector<16x1xf32>
    %54 = vector.broadcast %53 : vector<16x1xf32> to vector<16x16xf32>
    %55 = arith.mulf %50, %54 : vector<16x16xf32>
    %56 = arith.truncf %55 : vector<16x16xf32> to vector<16x16xbf16>
    %cst_22 = arith.constant dense<0.000000e+00> : vector<16x32xf32>
    %57 = tpu.matmul %56, %44, %cst_22 {dimension_numbers = #tpu.dot_dimension_numbers<[1], [0], [0], [1], [0, 0, 1, 1], [], []>} : vector<16x16xbf16>, vector<16x32xbf16>, vector<16x32xf32> -> vector<16x32xf32>
    %58 = vector.extract_strided_slice %41 {offsets = [0, 32], sizes = [16, 32], strides = [1, 1]} : vector<16x384xbf16> to vector<16x32xbf16>
    %59 = vector.extract_strided_slice %41 {offsets = [0, 160], sizes = [16, 32], strides = [1, 1]} : vector<16x384xbf16> to vector<16x32xbf16>
    %60 = vector.extract_strided_slice %41 {offsets = [0, 288], sizes = [16, 32], strides = [1, 1]} : vector<16x384xbf16> to vector<16x32xbf16>
    %cst_23 = arith.constant dense<0.000000e+00> : vector<16x16xf32>
    %61 = tpu.matmul %58, %59, %cst_23 {dimension_numbers = #tpu.dot_dimension_numbers<[1], [1], [0], [0], [0, 0, 1, 0], [], []>} : vector<16x32xbf16>, vector<16x32xbf16>, vector<16x16xf32> -> vector<16x16xf32>
    %cst_24 = arith.constant dense<0xFF800000> : vector<16xf32>
    %62 = vector.multi_reduction <maximumf>, %61, %cst_24 [1] : vector<16x16xf32> to vector<16xf32>
    %63 = vector.shape_cast %62 : vector<16xf32> to vector<16x1xf32>
    %64 = vector.broadcast %63 : vector<16x1xf32> to vector<16x16xf32>
    %65 = arith.subf %61, %64 : vector<16x16xf32>
    %66 = math.exp %65 : vector<16x16xf32>
    %cst_25 = arith.constant dense<0.000000e+00> : vector<16xf32>
    %67 = vector.multi_reduction <add>, %66, %cst_25 [1] : vector<16x16xf32> to vector<16xf32>
    %68 = vector.shape_cast %67 : vector<16xf32> to vector<16x1xf32>
    %69 = tpu.reciprocal %68 {approx = true} : vector<16x1xf32> -> vector<16x1xf32>
    %70 = vector.broadcast %69 : vector<16x1xf32> to vector<16x16xf32>
    %71 = arith.mulf %66, %70 : vector<16x16xf32>
    %72 = arith.truncf %71 : vector<16x16xf32> to vector<16x16xbf16>
    %cst_26 = arith.constant dense<0.000000e+00> : vector<16x32xf32>
    %73 = tpu.matmul %72, %60, %cst_26 {dimension_numbers = #tpu.dot_dimension_numbers<[1], [0], [0], [1], [0, 0, 1, 1], [], []>} : vector<16x16xbf16>, vector<16x32xbf16>, vector<16x32xf32> -> vector<16x32xf32>
    %74 = vector.extract_strided_slice %41 {offsets = [0, 64], sizes = [16, 32], strides = [1, 1]} : vector<16x384xbf16> to vector<16x32xbf16>
    %75 = vector.extract_strided_slice %41 {offsets = [0, 192], sizes = [16, 32], strides = [1, 1]} : vector<16x384xbf16> to vector<16x32xbf16>
    %76 = vector.extract_strided_slice %41 {offsets = [0, 320], sizes = [16, 32], strides = [1, 1]} : vector<16x384xbf16> to vector<16x32xbf16>
    %cst_27 = arith.constant dense<0.000000e+00> : vector<16x16xf32>
    %77 = tpu.matmul %74, %75, %cst_27 {dimension_numbers = #tpu.dot_dimension_numbers<[1], [1], [0], [0], [0, 0, 1, 0], [], []>} : vector<16x32xbf16>, vector<16x32xbf16>, vector<16x16xf32> -> vector<16x16xf32>
    %cst_28 = arith.constant dense<0xFF800000> : vector<16xf32>
    %78 = vector.multi_reduction <maximumf>, %77, %cst_28 [1] : vector<16x16xf32> to vector<16xf32>
    %79 = vector.shape_cast %78 : vector<16xf32> to vector<16x1xf32>
    %80 = vector.broadcast %79 : vector<16x1xf32> to vector<16x16xf32>
    %81 = arith.subf %77, %80 : vector<16x16xf32>
    %82 = math.exp %81 : vector<16x16xf32>
    %cst_29 = arith.constant dense<0.000000e+00> : vector<16xf32>
    %83 = vector.multi_reduction <add>, %82, %cst_29 [1] : vector<16x16xf32> to vector<16xf32>
    %84 = vector.shape_cast %83 : vector<16xf32> to vector<16x1xf32>
    %85 = tpu.reciprocal %84 {approx = true} : vector<16x1xf32> -> vector<16x1xf32>
    %86 = vector.broadcast %85 : vector<16x1xf32> to vector<16x16xf32>
    %87 = arith.mulf %82, %86 : vector<16x16xf32>
    %88 = arith.truncf %87 : vector<16x16xf32> to vector<16x16xbf16>
    %cst_30 = arith.constant dense<0.000000e+00> : vector<16x32xf32>
    %89 = tpu.matmul %88, %76, %cst_30 {dimension_numbers = #tpu.dot_dimension_numbers<[1], [0], [0], [1], [0, 0, 1, 1], [], []>} : vector<16x16xbf16>, vector<16x32xbf16>, vector<16x32xf32> -> vector<16x32xf32>
    %90 = vector.extract_strided_slice %41 {offsets = [0, 96], sizes = [16, 32], strides = [1, 1]} : vector<16x384xbf16> to vector<16x32xbf16>
    %91 = vector.extract_strided_slice %41 {offsets = [0, 224], sizes = [16, 32], strides = [1, 1]} : vector<16x384xbf16> to vector<16x32xbf16>
    %92 = vector.extract_strided_slice %41 {offsets = [0, 352], sizes = [16, 32], strides = [1, 1]} : vector<16x384xbf16> to vector<16x32xbf16>
    %cst_31 = arith.constant dense<0.000000e+00> : vector<16x16xf32>
    %93 = tpu.matmul %90, %91, %cst_31 {dimension_numbers = #tpu.dot_dimension_numbers<[1], [1], [0], [0], [0, 0, 1, 0], [], []>} : vector<16x32xbf16>, vector<16x32xbf16>, vector<16x16xf32> -> vector<16x16xf32>
    %cst_32 = arith.constant dense<0xFF800000> : vector<16xf32>
    %94 = vector.multi_reduction <maximumf>, %93, %cst_32 [1] : vector<16x16xf32> to vector<16xf32>
    %95 = vector.shape_cast %94 : vector<16xf32> to vector<16x1xf32>
    %96 = vector.broadcast %95 : vector<16x1xf32> to vector<16x16xf32>
    %97 = arith.subf %93, %96 : vector<16x16xf32>
    %98 = math.exp %97 : vector<16x16xf32>
    %cst_33 = arith.constant dense<0.000000e+00> : vector<16xf32>
    %99 = vector.multi_reduction <add>, %98, %cst_33 [1] : vector<16x16xf32> to vector<16xf32>
    %100 = vector.shape_cast %99 : vector<16xf32> to vector<16x1xf32>
    %101 = tpu.reciprocal %100 {approx = true} : vector<16x1xf32> -> vector<16x1xf32>
    %102 = vector.broadcast %101 : vector<16x1xf32> to vector<16x16xf32>
    %103 = arith.mulf %98, %102 : vector<16x16xf32>
    %104 = arith.truncf %103 : vector<16x16xf32> to vector<16x16xbf16>
    %cst_34 = arith.constant dense<0.000000e+00> : vector<16x32xf32>
    %105 = tpu.matmul %104, %92, %cst_34 {dimension_numbers = #tpu.dot_dimension_numbers<[1], [0], [0], [1], [0, 0, 1, 1], [], []>} : vector<16x16xbf16>, vector<16x32xbf16>, vector<16x32xf32> -> vector<16x32xf32>
    %106 = tpu.concatenate %57, %73, %89, %105 in 1 : vector<16x32xf32>, vector<16x32xf32>, vector<16x32xf32>, vector<16x32xf32> -> vector<16x128xf32>
    %107 = arith.truncf %106 : vector<16x128xf32> to vector<16x128xbf16>
    %c0_35 = arith.constant 0 : index
    %c0_36 = arith.constant 0 : index
    %c0_37 = arith.constant 0 : index
    %108 = vector.load %arg7[%c0_35, %c0_36, %c0_37] : memref<1x128x128xbf16, #tpu.memory_space<vmem>>, vector<1x128x128xbf16>
    %109 = vector.shape_cast %108 : vector<1x128x128xbf16> to vector<128x128xbf16>
    %cst_38 = arith.constant dense<0.000000e+00> : vector<16x128xf32>
    %110 = tpu.matmul %107, %109, %cst_38 {dimension_numbers = #tpu.dot_dimension_numbers<[1], [0], [0], [1], [0, 0, 1, 1], [], []>} : vector<16x128xbf16>, vector<128x128xbf16>, vector<16x128xf32> -> vector<16x128xf32>
    %111 = arith.addf %3, %110 : vector<16x128xf32>
    %c0_39 = arith.constant 0 : index
    %c0_40 = arith.constant 0 : index
    %c0_41 = arith.constant 0 : index
    %112 = vector.load %arg8[%c0_39, %c0_40, %c0_41] : memref<1x1x128xf32, #tpu.memory_space<vmem>>, vector<1x1x128xf32>
    %113 = vector.shape_cast %112 : vector<1x1x128xf32> to vector<128xf32>
    %114 = vector.shape_cast %113 : vector<128xf32> to vector<1x128xf32>
    %115 = vector.broadcast %114 : vector<1x128xf32> to vector<16x128xf32>
    %116 = arith.addf %111, %115 : vector<16x128xf32>
    %c0_42 = arith.constant 0 : index
    %c0_43 = arith.constant 0 : index
    %c0_44 = arith.constant 0 : index
    %117 = vector.load %arg9[%c0_42, %c0_43, %c0_44] : memref<1x1x128xf32, #tpu.memory_space<vmem>>, vector<1x1x128xf32>
    %118 = vector.shape_cast %117 : vector<1x1x128xf32> to vector<128xf32>
    %c0_45 = arith.constant 0 : index
    %c0_46 = arith.constant 0 : index
    %c0_47 = arith.constant 0 : index
    %119 = vector.load %arg10[%c0_45, %c0_46, %c0_47] : memref<1x1x128xf32, #tpu.memory_space<vmem>>, vector<1x1x128xf32>
    %120 = vector.shape_cast %119 : vector<1x1x128xf32> to vector<128xf32>
    %cst_48 = arith.constant dense<0.000000e+00> : vector<16xf32>
    %121 = vector.multi_reduction <add>, %116, %cst_48 [1] : vector<16x128xf32> to vector<16xf32>
    %122 = vector.shape_cast %121 : vector<16xf32> to vector<16x1xf32>
    %cst_49 = arith.constant 1.280000e+02 : f32
    %123 = vector.broadcast %cst_49 : f32 to vector<16x1xf32>
    %124 = arith.divf %122, %123 : vector<16x1xf32>
    %125 = vector.broadcast %124 : vector<16x1xf32> to vector<16x128xf32>
    %126 = arith.subf %116, %125 : vector<16x128xf32>
    %127 = arith.mulf %126, %126 : vector<16x128xf32>
    %cst_50 = arith.constant dense<0.000000e+00> : vector<16xf32>
    %128 = vector.multi_reduction <add>, %127, %cst_50 [1] : vector<16x128xf32> to vector<16xf32>
    %129 = vector.shape_cast %128 : vector<16xf32> to vector<16x1xf32>
    %cst_51 = arith.constant 1.280000e+02 : f32
    %130 = vector.broadcast %cst_51 : f32 to vector<16x1xf32>
    %131 = arith.divf %129, %130 : vector<16x1xf32>
    %132 = vector.broadcast %124 : vector<16x1xf32> to vector<16x128xf32>
    %133 = arith.subf %116, %132 : vector<16x128xf32>
    %cst_52 = arith.constant 9.99999997E-7 : f32
    %134 = vector.broadcast %cst_52 : f32 to vector<16x1xf32>
    %135 = arith.addf %131, %134 : vector<16x1xf32>
    %136 = math.rsqrt %135 : vector<16x1xf32>
    %137 = vector.broadcast %136 : vector<16x1xf32> to vector<16x128xf32>
    %138 = arith.mulf %133, %137 : vector<16x128xf32>
    %139 = vector.shape_cast %118 : vector<128xf32> to vector<1x128xf32>
    %140 = vector.broadcast %139 : vector<1x128xf32> to vector<16x128xf32>
    %141 = arith.mulf %138, %140 : vector<16x128xf32>
    %142 = vector.shape_cast %120 : vector<128xf32> to vector<1x128xf32>
    %143 = vector.broadcast %142 : vector<1x128xf32> to vector<16x128xf32>
    %144 = arith.addf %141, %143 : vector<16x128xf32>
    %145 = arith.truncf %144 : vector<16x128xf32> to vector<16x128xbf16>
    %c0_53 = arith.constant 0 : index
    %c0_54 = arith.constant 0 : index
    %c0_55 = arith.constant 0 : index
    %146 = vector.load %arg11[%c0_53, %c0_54, %c0_55] : memref<1x128x256xbf16, #tpu.memory_space<vmem>>, vector<1x128x256xbf16>
    %147 = vector.shape_cast %146 : vector<1x128x256xbf16> to vector<128x256xbf16>
    %cst_56 = arith.constant dense<0.000000e+00> : vector<16x256xf32>
    %148 = tpu.matmul %145, %147, %cst_56 {dimension_numbers = #tpu.dot_dimension_numbers<[1], [0], [0], [1], [0, 0, 1, 1], [], []>} : vector<16x128xbf16>, vector<128x256xbf16>, vector<16x256xf32> -> vector<16x256xf32>
    %c0_57 = arith.constant 0 : index
    %c0_58 = arith.constant 0 : index
    %c0_59 = arith.constant 0 : index
    %149 = vector.load %arg12[%c0_57, %c0_58, %c0_59] : memref<1x1x256xf32, #tpu.memory_space<vmem>>, vector<1x1x256xf32>
    %150 = vector.shape_cast %149 : vector<1x1x256xf32> to vector<256xf32>
    %151 = vector.shape_cast %150 : vector<256xf32> to vector<1x256xf32>
    %152 = vector.broadcast %151 : vector<1x256xf32> to vector<16x256xf32>
    %153 = arith.addf %148, %152 : vector<16x256xf32>
    %cst_60 = arith.constant 5.000000e-01 : f32
    %154 = vector.broadcast %cst_60 : f32 to vector<16x256xf32>
    %155 = arith.mulf %154, %153 : vector<16x256xf32>
    %cst_61 = arith.constant 0.707106769 : f32
    %156 = vector.broadcast %cst_61 : f32 to vector<16x256xf32>
    %157 = arith.mulf %153, %156 : vector<16x256xf32>
    %158 = math.erf %157 : vector<16x256xf32>
    %cst_62 = arith.constant 1.000000e+00 : f32
    %159 = vector.broadcast %cst_62 : f32 to vector<16x256xf32>
    %160 = arith.addf %159, %158 : vector<16x256xf32>
    %161 = arith.mulf %155, %160 : vector<16x256xf32>
    %162 = arith.truncf %161 : vector<16x256xf32> to vector<16x256xbf16>
    %c0_63 = arith.constant 0 : index
    %c0_64 = arith.constant 0 : index
    %c0_65 = arith.constant 0 : index
    %163 = vector.load %arg13[%c0_63, %c0_64, %c0_65] : memref<1x256x128xbf16, #tpu.memory_space<vmem>>, vector<1x256x128xbf16>
    %164 = vector.shape_cast %163 : vector<1x256x128xbf16> to vector<256x128xbf16>
    %cst_66 = arith.constant dense<0.000000e+00> : vector<16x128xf32>
    %165 = tpu.matmul %162, %164, %cst_66 {dimension_numbers = #tpu.dot_dimension_numbers<[1], [0], [0], [1], [0, 0, 1, 1], [], []>} : vector<16x256xbf16>, vector<256x128xbf16>, vector<16x128xf32> -> vector<16x128xf32>
    %166 = arith.addf %116, %165 : vector<16x128xf32>
    %c0_67 = arith.constant 0 : index
    %c0_68 = arith.constant 0 : index
    %c0_69 = arith.constant 0 : index
    %167 = vector.load %arg14[%c0_67, %c0_68, %c0_69] : memref<1x1x128xf32, #tpu.memory_space<vmem>>, vector<1x1x128xf32>
    %168 = vector.shape_cast %167 : vector<1x1x128xf32> to vector<128xf32>
    %169 = vector.shape_cast %168 : vector<128xf32> to vector<1x128xf32>
    %170 = vector.broadcast %169 : vector<1x128xf32> to vector<16x128xf32>
    %171 = arith.addf %166, %170 : vector<16x128xf32>
    %c0_70 = arith.constant 0 : index
    %c0_71 = arith.constant 0 : index
    %172 = vector.load %arg18[%c0_70, %c0_71] : memref<16x128xf32, #tpu.memory_space<vmem>>, vector<16x128xf32>
    tpu.vector_store %arg18[%c0_70, %c0_71], %171 {strides = array<i32>} : memref<16x128xf32, #tpu.memory_space<vmem>>, vector<16x128xf32>,
    %c1_i32 = arith.constant 1 : i32
    %173 = arith.cmpi eq, %arg1, %c1_i32 : i32
    %174 = arith.extui %173 : i1 to i32
    %c0_i32_72 = arith.constant 0 : i32
    %175 = arith.cmpi ne, %174, %c0_i32_72 : i32
    scf.if %175 {
      %c0_73 = arith.constant 0 : index
      %c0_74 = arith.constant 0 : index
      %176 = vector.load %arg15[%c0_73, %c0_74] : memref<1x128xf32, #tpu.memory_space<vmem>>, vector<1x128xf32>
      %177 = vector.shape_cast %176 : vector<1x128xf32> to vector<128xf32>
      %c0_75 = arith.constant 0 : index
      %c0_76 = arith.constant 0 : index
      %178 = vector.load %arg16[%c0_75, %c0_76] : memref<1x128xf32, #tpu.memory_space<vmem>>, vector<1x128xf32>
      %179 = vector.shape_cast %178 : vector<1x128xf32> to vector<128xf32>
      %cst_77 = arith.constant dense<0.000000e+00> : vector<16xf32>
      %180 = vector.multi_reduction <add>, %171, %cst_77 [1] : vector<16x128xf32> to vector<16xf32>
      %181 = vector.shape_cast %180 : vector<16xf32> to vector<16x1xf32>
      %cst_78 = arith.constant 1.280000e+02 : f32
      %182 = vector.broadcast %cst_78 : f32 to vector<16x1xf32>
      %183 = arith.divf %181, %182 : vector<16x1xf32>
      %184 = vector.broadcast %183 : vector<16x1xf32> to vector<16x128xf32>
      %185 = arith.subf %171, %184 : vector<16x128xf32>
      %186 = arith.mulf %185, %185 : vector<16x128xf32>
      %cst_79 = arith.constant dense<0.000000e+00> : vector<16xf32>
      %187 = vector.multi_reduction <add>, %186, %cst_79 [1] : vector<16x128xf32> to vector<16xf32>
      %188 = vector.shape_cast %187 : vector<16xf32> to vector<16x1xf32>
      %cst_80 = arith.constant 1.280000e+02 : f32
      %189 = vector.broadcast %cst_80 : f32 to vector<16x1xf32>
      %190 = arith.divf %188, %189 : vector<16x1xf32>
      %191 = vector.broadcast %183 : vector<16x1xf32> to vector<16x128xf32>
      %192 = arith.subf %171, %191 : vector<16x128xf32>
      %cst_81 = arith.constant 9.99999997E-7 : f32
      %193 = vector.broadcast %cst_81 : f32 to vector<16x1xf32>
      %194 = arith.addf %190, %193 : vector<16x1xf32>
      %195 = math.rsqrt %194 : vector<16x1xf32>
      %196 = vector.broadcast %195 : vector<16x1xf32> to vector<16x128xf32>
      %197 = arith.mulf %192, %196 : vector<16x128xf32>
      %198 = vector.shape_cast %177 : vector<128xf32> to vector<1x128xf32>
      %199 = vector.broadcast %198 : vector<1x128xf32> to vector<16x128xf32>
      %200 = arith.mulf %197, %199 : vector<16x128xf32>
      %201 = vector.shape_cast %179 : vector<128xf32> to vector<1x128xf32>
      %202 = vector.broadcast %201 : vector<1x128xf32> to vector<16x128xf32>
      %203 = arith.addf %200, %202 : vector<16x128xf32>
      %204 = vector.shape_cast %203 : vector<16x128xf32> to vector<1x16x128xf32>
      %c0_82 = arith.constant 0 : index
      %c0_83 = arith.constant 0 : index
      %c0_84 = arith.constant 0 : index
      %205 = vector.load %arg17[%c0_82, %c0_83, %c0_84] : memref<1x16x128xf32, #tpu.memory_space<vmem>>, vector<1x16x128xf32>
      tpu.vector_store %arg17[%c0_82, %c0_83, %c0_84], %204 {strides = array<i32>} : memref<1x16x128xf32, #tpu.memory_space<vmem>>, vector<1x16x128xf32>,
    } else {
    }
    return
  }
  func.func @transform_0(%arg0: i32, %arg1: i32) -> (i32, i32, i32) {
    %c0_i32 = arith.constant 0 : i32
    %c0_i32_0 = arith.constant 0 : i32
    %c0_i32_1 = arith.constant 0 : i32
    return %arg0, %c0_i32, %c0_i32_0 : i32, i32, i32
  }
  func.func @transform_1(%arg0: i32, %arg1: i32) -> (i32, i32, i32) {
    %c0_i32 = arith.constant 0 : i32
    %c0_i32_0 = arith.constant 0 : i32
    %c0_i32_1 = arith.constant 0 : i32
    return %arg1, %c0_i32, %c0_i32_0 : i32, i32, i32
  }
  func.func @transform_2(%arg0: i32, %arg1: i32) -> (i32, i32, i32) {
    %c0_i32 = arith.constant 0 : i32
    %c0_i32_0 = arith.constant 0 : i32
    %c0_i32_1 = arith.constant 0 : i32
    return %arg1, %c0_i32, %c0_i32_0 : i32, i32, i32
  }
  func.func @transform_3(%arg0: i32, %arg1: i32) -> (i32, i32, i32) {
    %c0_i32 = arith.constant 0 : i32
    %c0_i32_0 = arith.constant 0 : i32
    %c0_i32_1 = arith.constant 0 : i32
    return %arg1, %c0_i32, %c0_i32_0 : i32, i32, i32
  }
  func.func @transform_4(%arg0: i32, %arg1: i32) -> (i32, i32, i32) {
    %c0_i32 = arith.constant 0 : i32
    %c0_i32_0 = arith.constant 0 : i32
    %c0_i32_1 = arith.constant 0 : i32
    return %arg1, %c0_i32, %c0_i32_0 : i32, i32, i32
  }
  func.func @transform_5(%arg0: i32, %arg1: i32) -> (i32, i32, i32) {
    %c0_i32 = arith.constant 0 : i32
    %c0_i32_0 = arith.constant 0 : i32
    %c0_i32_1 = arith.constant 0 : i32
    return %arg1, %c0_i32, %c0_i32_0 : i32, i32, i32
  }
  func.func @transform_6(%arg0: i32, %arg1: i32) -> (i32, i32, i32) {
    %c0_i32 = arith.constant 0 : i32
    %c0_i32_0 = arith.constant 0 : i32
    %c0_i32_1 = arith.constant 0 : i32
    return %arg1, %c0_i32, %c0_i32_0 : i32, i32, i32
  }
  func.func @transform_7(%arg0: i32, %arg1: i32) -> (i32, i32, i32) {
    %c0_i32 = arith.constant 0 : i32
    %c0_i32_0 = arith.constant 0 : i32
    %c0_i32_1 = arith.constant 0 : i32
    return %arg1, %c0_i32, %c0_i32_0 : i32, i32, i32
  }
  func.func @transform_8(%arg0: i32, %arg1: i32) -> (i32, i32, i32) {
    %c0_i32 = arith.constant 0 : i32
    %c0_i32_0 = arith.constant 0 : i32
    %c0_i32_1 = arith.constant 0 : i32
    return %arg1, %c0_i32, %c0_i32_0 : i32, i32, i32
  }
  func.func @transform_9(%arg0: i32, %arg1: i32) -> (i32, i32, i32) {
    %c0_i32 = arith.constant 0 : i32
    %c0_i32_0 = arith.constant 0 : i32
    %c0_i32_1 = arith.constant 0 : i32
    return %arg1, %c0_i32, %c0_i32_0 : i32, i32, i32
  }
  func.func @transform_10(%arg0: i32, %arg1: i32) -> (i32, i32, i32) {
    %c0_i32 = arith.constant 0 : i32
    %c0_i32_0 = arith.constant 0 : i32
    %c0_i32_1 = arith.constant 0 : i32
    return %arg1, %c0_i32, %c0_i32_0 : i32, i32, i32
  }
  func.func @transform_11(%arg0: i32, %arg1: i32) -> (i32, i32, i32) {
    %c0_i32 = arith.constant 0 : i32
    %c0_i32_0 = arith.constant 0 : i32
    %c0_i32_1 = arith.constant 0 : i32
    return %arg1, %c0_i32, %c0_i32_0 : i32, i32, i32
  }
  func.func @transform_12(%arg0: i32, %arg1: i32) -> (i32, i32, i32) {
    %c0_i32 = arith.constant 0 : i32
    %c0_i32_0 = arith.constant 0 : i32
    %c0_i32_1 = arith.constant 0 : i32
    return %arg1, %c0_i32, %c0_i32_0 : i32, i32, i32
  }
  func.func @transform_13(%arg0: i32, %arg1: i32) -> (i32, i32) {
    %c0_i32 = arith.constant 0 : i32
    %c0_i32_0 = arith.constant 0 : i32
    %c0_i32_1 = arith.constant 0 : i32
    return %c0_i32, %c0_i32_0 : i32, i32
  }
  func.func @transform_14(%arg0: i32, %arg1: i32) -> (i32, i32) {
    %c0_i32 = arith.constant 0 : i32
    %c0_i32_0 = arith.constant 0 : i32
    %c0_i32_1 = arith.constant 0 : i32
    return %c0_i32, %c0_i32_0 : i32, i32
  }
  func.func @transform_15(%arg0: i32, %arg1: i32) -> (i32, i32, i32) {
    %c0_i32 = arith.constant 0 : i32
    %c0_i32_0 = arith.constant 0 : i32
    %c0_i32_1 = arith.constant 0 : i32
    return %arg0, %c0_i32, %c0_i32_0 : i32, i32, i32
  }
}

</mosaic_0001>

<bundles_post_ra>
// kernel: tpu_custom_call.1
= control target key start
LH: loop header
LB: loop body
LE: loop exit
PB: predicated region body
PF: predicated region fallthrough
CT: control target
= control target key end

     0   :  { %s4372_s0 = inlined_call_operand.hbm [shape: f32[2,16,128], index: 0, kind: input, shape index: {}]   ;;  %s4373_s1 = inlined_call_operand.hbm [shape: f32[2,1,128], index: 1, kind: input, shape index: {}]   ;;  %s4374_s2 = inlined_call_operand.hbm [shape: f32[2,1,128], index: 2, kind: input, shape index: {}]   ;;  %s4375_s3 = inlined_call_operand.hbm [shape: bf16[2,128,384], index: 3, kind: input, shape index: {}]   ;;  %s4376_s4 = inlined_call_operand.hbm [shape: f32[2,1,384], index: 4, kind: input, shape index: {}]   ;;  %s4377_s5 = inlined_call_operand.hbm [shape: bf16[2,128,128], index: 5, kind: input, shape index: {}]   ;;  %s4378_s6 = inlined_call_operand.vmem [shape: f32[2,1,128], index: 6, kind: input, shape index: {}]   ;;  %s4379_s7 = inlined_call_operand.hbm [shape: f32[2,1,128], index: 7, kind: input, shape index: {}]   ;;  %s4380_s8 = inlined_call_operand.hbm [shape: f32[2,1,128], index: 8, kind: input, shape index: {}]   ;;  %s4381_s9 = inlined_call_operand.hbm [shape: bf16[2,128,256], index: 9, kind: input, shape index: {}]   ;;  %s4382_s10 = inlined_call_operand.vmem [shape: f32[2,1,256], index: 10, kind: input, shape index: {}]   ;;  %s4383_s11 = inlined_call_operand.hbm [shape: bf16[2,256,128], index: 11, kind: input, shape index: {}]   ;;  %s4384_s12 = inlined_call_operand.vmem [shape: f32[2,1,128], index: 12, kind: input, shape index: {}]   ;;  %s4385_s13 = inlined_call_operand.vmem [shape: f32[1,128], index: 13, kind: input, shape index: {}]   ;;  %s4386_s14 = inlined_call_operand.vmem [shape: f32[1,128], index: 14, kind: input, shape index: {}]   ;;  %s4387_s15 = inlined_call_operand.hbm [shape: f32[2,16,128], index: 15, kind: output, shape index: {}]  }
   0x1   :  { %4406 = sst [smem:[#allocation39_spill]] %s4372_s0 }
   0x2   :  { %4407 = sst [smem:[#allocation40_spill]] %s4373_s1 }
   0x3   :  { %4408 = sst [smem:[#allocation41_spill]] %s4374_s2 }
   0x4   :  { %4409 = sst [smem:[#allocation42_spill]] %s4375_s3 }
   0x5   :  { %4410 = sst [smem:[#allocation43_spill]] %s4376_s4 }
   0x6   :  { %4411 = sst [smem:[#allocation44_spill]] %s4377_s5 }
   0x7   :  { %4412 = sst [smem:[#allocation45_spill]] %s4378_s6 }
   0x8   :  { %4413 = sst [smem:[#allocation46_spill]] %s4379_s7 }
   0x9   :  { %4414 = sst [smem:[#allocation47_spill]] %s4380_s8 }
   0xa   :  { %4415 = sst [smem:[#allocation48_spill]] %s4381_s9 }
   0xb   :  { %4416 = sst [smem:[#allocation49_spill]] %s4382_s10 }
   0xc   :  { %4417 = sst [smem:[#allocation50_spill]] %s4383_s11 }
   0xd   :  { %4418 = sst [smem:[#allocation51_spill]] %s4384_s12 }
   0xe   :  { %4419 = sst [smem:[#allocation52_spill]] %s4385_s13 }
   0xf   :  { %4420 = sst [smem:[#allocation53_spill]] %s4386_s14 }
  0x10   :  { %4421 = sst [smem:[#allocation54_spill]] %s4387_s15 }
  0x11   :  { %20 = vsyncpa [#allocation4], 0 }
  0x12   :  { %22 = vsyncpa [#allocation4 + $0x1], 0 }
  0x13   :  { %23 = vsyncpa [#allocation7], 0 }
  0x14   :  { %25 = vsyncpa [#allocation7 + $0x1], 0 }
  0x15   :  { %26 = vsyncpa [#allocation10], 0 }
  0x16   :  { %28 = vsyncpa [#allocation10 + $0x1], 0 }
  0x17   :  { %29 = vsyncpa [#allocation13], 0 }
  0x18   :  { %31 = vsyncpa [#allocation13 + $0x1], 0 }
  0x19   :  { %32 = vsyncpa [#allocation16], 0 }
  0x1a   :  { %34 = vsyncpa [#allocation16 + $0x1], 0 }
  0x1b   :  { %35 = vsyncpa [#allocation19], 0 }
  0x1c   :  { %37 = vsyncpa [#allocation19 + $0x1], 0 }
  0x1d   :  { %38 = vsyncpa [#allocation5], 0 }
  0x1e   :  { %40 = vsyncpa [#allocation5 + $0x1], 0  ;;  %s3628_s18 = smov 0   ;;  %s3630_s19 = smov 0  }
  0x1f   :  { %s3632_s20 = smov 0   ;;  %s3634_s21 = smov 0  }
  0x20   :  { %s3636_s22 = smov 0   ;;  %s3638_s23 = smov 0  }
  0x21   :  { %s3640_s24 = smov 0   ;;  %s3642_s25 = smov 0  }
  0x22   :  { %s3644_s26 = smov 0   ;;  %s3646_s27 = smov 0  }
  0x23   :  { %s3648_s28 = smov 0  }
  0x24 LB: > { %4422 = sst [smem:[#allocation28_spill]] %s3502_s20  ;;  %p73_p0 = scmp.eq.s32.totalorder %s3534_s28, 0  ;;  %s3534_s28 = sphi %s3648_s28, %s46_s28   ;;  %s3530_s27 = sphi %s3646_s27, %s4486_s27   ;;  %s3526_s26 = sphi %s3644_s26, %s4485_s26   ;;  %s3522_s25 = sphi %s3642_s25, %s4484_s25   ;;  %s3518_s24 = sphi %s3640_s24, %s4483_s24   ;;  %s3514_s23 = sphi %s3638_s23, %s4482_s23   ;;  %s3510_s22 = sphi %s3636_s22, %s4490_s22   ;;  %s3506_s21 = sphi %s3634_s21, %s4489_s21   ;;  %s3502_s20 = sphi %s3632_s20, %s4480_s20   ;;  %s3498_s19 = sphi %s3630_s19, %s4488_s19   ;;  %s3494_s18 = sphi %s3628_s18, %s4487_s18  }
  0x25   : > { %4423 = sst [smem:[#allocation29_spill]] %s3514_s23  ;;  %p98_p1 = scmp.ne.s32.totalorder %s3502_s20, %s3498_s19 }
  0x26   : > { %4424 = sst [smem:[#allocation30_spill]] %s3518_s24  ;;  %p4396_p2 = scmp.lt.s32.totalorder %s3534_s28, 4 }
  0x27   : > { %4425 = sst [smem:[#allocation31_spill]] %s3522_s25  ;;  %s3689_s30 = sand.u32 1, %s3534_s28  }
  0x28   : > { %4426 = sst [smem:[#allocation32_spill]] %s3526_s26  ;;  %p100_p3 = por %p98_p1, %p73_p0 }
  0x29   : > { %4427 = sst [smem:[#allocation33_spill]] %s3530_s27  ;;  %s3694_s16 = sand.u32 1, %s3502_s20  }
  0x2a   : > { %s4428_s1 = sld [smem:[#allocation40_spill]]  ;;  %s513_s29 = scalar_lea.vmem [#allocation6], %s3694_s16 }
  0x2b   : > { %s520_s13 = sshll.u32 %s513_s29, 4  ;;  %p3703_p4 = pnand %p4396_p2, %p100_p3  ;;  %s521_s13 = int_to_ptr.vmem [resolvable:$true] %s520_s13 }
  0x2c   : > { %p2499_p5 = scmp.ge.s32.totalorder %s3534_s28, 1  ;;  %p702_p6 = scmp.lt.s32.totalorder %s3534_s28, 5 }
  0x2d   : > { %s4390_s15 = scalar_lea.sflag [#allocation7], %s3689_s30  ;;  %s2850_s29 = smul.u32 192, %s3694_s16 }
  0x2e   : > { %p3714_p7 = pnand %p2499_p5, %p702_p6  ;;  %s2851_s17 = smul.u32 192, %s3526_s26 }
  0x2f   : > { %s4432_s3 = sld [smem:[#allocation42_spill]]  ;;  %s548_s24 = scalar_lea.vmem [#allocation9], %s2850_s29 }
  0x30   : > { %s516_s25 = scalar_lea.hbm %s4428_s1, %s3526_s26  ;;  %s556_s11 = sshll.u32 %s548_s24, 4  ;;  %s557_s11 = int_to_ptr.vmem [resolvable:$true] %s556_s11 }
  0x31   : > { %s518_s14 = sshll.u32 %s516_s25, 4  ;;  %s4397_s7 = scalar_lea.sflag [#allocation10], %s3689_s30  ;;  %s519_s14 = int_to_ptr.hbm [resolvable:$true] %s518_s14 }
  0x32   : > { %2884 = dma.hbm_to_vmem [thread:$0]  (!%p3703_p4), %s519_s14, 16, %s521_s13, %s4390_s15  }
  0x33   : > { %s4430_s25 = scalar_select %p3714_p7, 1, 0 }
  0x34   : > { %s3536_s13 = smov 192   ;;  %s3537_s14 = smov 12  }
  0x35   : > { %4431 = sst [smem:[#allocation34_spill]] %s4430_s25  ;;  %s553_s6 = scalar_lea.hbm %s4432_s3, %s2851_s17 }
  0x36   : > { %s554_s9 = sshll.u32 %s553_s6, 4  ;;  %s2490_s15 = sshll.u32 %s3694_s16, 6  ;;  %s555_s9 = int_to_ptr.hbm [resolvable:$true] %s554_s9 }
  0x37   : > { %2890 = dma.hbm_to_vmem [thread:$0]  (!%p3703_p4), %s555_s9, 3072, %s557_s11, %s4397_s7, %s3536_s13, %s3536_s13, %s3537_s14  }
  0x38   : > { %s2782_s25 = sshll.u32 %s3526_s26, 6  ;;  %s4433_s5 = sld [smem:[#allocation44_spill]] }
  0x39   : > { %s589_s29 = scalar_lea.vmem [#allocation12], %s2490_s15  ;;  %s4395_s3 = scalar_lea.sflag [#allocation13], %s3689_s30 }
  0x3a   : > { %s597_s17 = sshll.u32 %s589_s29, 4  ;;  %s4392_s9 = smov 64   ;;  %s598_s17 = int_to_ptr.vmem [resolvable:$true] %s597_s17 }
  0x3b   : > { %s4393_s11 = smov 4   ;;  %s4434_s8 = sld [smem:[#allocation47_spill]] }
  0x3c   : > { %s633_s14 = scalar_lea.vmem [#allocation15], %s3694_s16  ;;  %s2483_s29 = sadd.s32 4294967294, %s3534_s28  }
  0x3d   : > { %s640_s1 = sshll.u32 %s633_s14, 4  ;;  %s58_s15 = sadd.s32 1, %s3530_s27  ;;  %s641_s1 = int_to_ptr.vmem [resolvable:$true] %s640_s1 }
  0x3e   : > { %s594_s24 = scalar_lea.hbm %s4433_s5, %s2782_s25  ;;  %s65_s25 = sadd.s32 1, %s3514_s23 }
  0x3f   : > { %s595_s6 = sshll.u32 %s594_s24, 4  ;;  %s4394_s24 = scalar_lea.sflag [#allocation16], %s3689_s30  ;;  %s596_s6 = int_to_ptr.hbm [resolvable:$true] %s595_s6 }
  0x40   : > { %2896 = dma.hbm_to_vmem [thread:$0]  (!%p3703_p4), %s596_s6, 1024, %s598_s17, %s4395_s3, %s4392_s9, %s4392_s9, %s4393_s11  }
  0x41   : > { %s636_s13 = scalar_lea.hbm %s4434_s8, %s3526_s26  ;;  %s3752_s6 = sadd.s32 4294967295, %s3534_s28  }
  0x42   : > { %s638_s10 = sshll.u32 %s636_s13, 4  ;;  %s55_s17 = sadd.s32 1, %s3526_s26  ;;  %s639_s10 = int_to_ptr.hbm [resolvable:$true] %s638_s10 }
  0x43   : > { %2902 = dma.hbm_to_vmem [thread:$0]  (!%p3703_p4), %s639_s10, 16, %s641_s1, %s4394_s24  }
  0x44   : > { %p56_p8 = scmp.ge.s32.totalorder %s55_s17, 2  ;;  %p72_p9 = scmp.ne.s32.totalorder %s3514_s23, %s3510_s22 }
  0x45   : > { %p78_p11 = scmp.ne.s32.totalorder %s3510_s22, %s3506_s21  ;;  %p79_p13 = scmp.eq.s32.totalorder %s3752_s6, 0 }
  0x46   : > { %s4492_s17 = smov (%p56_p8, %s55_s17), 0  ;;  %s4494_s15 = smov (!%p56_p8, %s58_s15), %s3530_s27 }
  0x47   : > { %4435 = sst [smem:[#allocation35_spill]] %s4492_s17  ;;  %p3768_p10 = por %p73_p0, %p72_p9 }
  0x48   : > { %p60_p12 = scmp.ge.s32.totalorder %s4494_s15, 2  ;;  %s88_s14 = ssub.s32 %s3526_s26, %s4492_s17 }
  0x49   : > { %p104_p1 = scmp.ne.s32.totalorder %s3498_s19, %s3494_s18  ;;  %p3784_p3 = por %p79_p13, %p78_p11 }
  0x4a   : > { %s4496_s15 = smov (%p60_p12, %s4494_s15), 0  ;;  %p89_p0 = scmp.eq.s32.totalorder %s88_s14, 0 }
  0x4b   : > { %4437 = sst [smem:[#allocation36_spill]] %s4496_s15  ;;  %s62_s10 = ssub.s32 %s3530_s27, %s4496_s15 }
  0x4c   : > { %p3790_p5 = por %p104_p1, %p79_p13  ;;  %p63_p6 = scmp.eq.s32.totalorder %s62_s10, 0 }
  0x4d   : > { %p456_p8 = scmp.eq.s32.totalorder %s3752_s6, 3  ;;  %s4440_s11 = sadd.s32 1, %s3502_s20 }
  0x4e   : > { %s3798_s18 = scalar_select %p89_p0, %s3502_s20, %s4440_s11  }
  0x4f   : > { %s3801_s24 = scalar_select %p63_p6, %s3514_s23, %s65_s25  }
  0x50   : > { %4441 = sst [smem:[#allocation37_spill]] %s3798_s18  ;;  %p3806_p12 = por %p456_p8, %p72_p9 }
  0x51   : > { %4442 = sst [smem:[#allocation38_spill]] %s3801_s24  ;;  %p462_p2 = scmp.eq.s32.totalorder %s2483_s29, 3 }
  0x52   : > { %s488_s14 = sand.u32 1, %s3514_s23   ;;  %s2781_s7 = sshll.u32 %s3530_s27, 4 }
  0x53   : > { %p3815_p13 = por %p462_p2, %p78_p11  ;;  %s2486_s5 = sshll.u32 %s488_s14, 4 }
  0x54   : > { %s4445_s0 = sld [smem:[#allocation39_spill]]  ;;  %s492_s29 = scalar_lea.vmem [#allocation3], %s2486_s5 }
  0x55   : > { %s500_s17 = sshll.u32 %s492_s29, 4  ;;  %p4446_p9 = scmp.lt.s32.totalorder %s3534_s28, 4  ;;  %s501_s17 = int_to_ptr.vmem [resolvable:$true] %s500_s17 }
  0x56   : > { %s489_s27 = scalar_lea.sflag [#allocation4], %s488_s14  ;;  %s4402_s24 = smov 128  }
  0x57   : > { %p2879_p2 = pnand %p4446_p9, %p3768_p10  ;;  %s4403_s23 = smov 8  }
  0x58   : > { %s4447_s2 = sld [smem:[#allocation41_spill]]  ;;  %s2852_s13 = smul.u32 3, %s3694_s16 }
  0x59   : > { %s4448_s14 = scalar_lea.sflag [#allocation7], %s3689_s30  ;;  %s4449_s4 = sld [smem:[#allocation43_spill]] }
  0x5a   : > { %s497_s25 = scalar_lea.hbm %s4445_s0, %s2781_s7  ;;  %s4450_s0 = sld [smem:[#allocation46_spill]] }
  0x5b   : > { %s498_s15 = sshll.u32 %s497_s25, 4  ;;  %s530_s25 = scalar_lea.vmem [#allocation8], %s3694_s16  ;;  %s499_s15 = int_to_ptr.hbm [resolvable:$true] %s498_s15 }
  0x5c   : > { %2881 = dma.hbm_to_vmem [thread:$0]  (!%p2879_p2), %s499_s15, 256, %s501_s17, %s489_s27, %s4402_s24, %s4402_s24, %s4403_s23  }
  0x5d   : > { %s537_s5 = sshll.u32 %s530_s25, 4  ;;  %s2853_s27 = smul.u32 3, %s3526_s26  ;;  %s538_s5 = int_to_ptr.vmem [resolvable:$true] %s537_s5 }
  0x5e   : > { %s533_s11 = scalar_lea.hbm %s4447_s2, %s3526_s26  ;;  %s570_s17 = scalar_lea.vmem [#allocation11], %s2852_s13 }
  0x5f   : > { %s535_s29 = sshll.u32 %s533_s11, 4  ;;  %s578_s15 = sshll.u32 %s570_s17, 4  ;;  %s536_s29 = int_to_ptr.hbm [resolvable:$true] %s535_s29  ;;  %s579_s15 = int_to_ptr.vmem [resolvable:$true] %s578_s15 }
  0x60   : > { %2887 = dma.hbm_to_vmem [thread:$0]  (!%p3703_p4), %s536_s29, 16, %s538_s5, %s4448_s14  }
  0x61   : > { %s574_s24 = scalar_lea.hbm %s4449_s4, %s2853_s27  ;;  %s619_s2 = scalar_lea.hbm %s4450_s0, %s3526_s26 }
  0x62   : > { %s576_s11 = sshll.u32 %s574_s24, 4  ;;  %s621_s5 = sshll.u32 %s619_s2, 4  ;;  %s577_s11 = int_to_ptr.hbm [resolvable:$true] %s576_s11  ;;  %s622_s5 = int_to_ptr.hbm [resolvable:$true] %s621_s5 }
  0x63   : > { %s4451_s29 = scalar_lea.sflag [#allocation10], %s3689_s30  ;;  %s616_s13 = scalar_lea.vmem [#allocation14], %s3694_s16 }
  0x64   : > { %2893 = dma.hbm_to_vmem [thread:$0]  (!%p3703_p4), %s577_s11, 48, %s579_s15, %s4451_s29  }
  0x65   : > { %s623_s14 = sshll.u32 %s616_s13, 4  ;;  %s2493_s17 = sshll.u32 %s3694_s16, 7  ;;  %s624_s14 = int_to_ptr.vmem [resolvable:$true] %s623_s14 }
  0x66   : > { %s4452_s27 = scalar_lea.sflag [#allocation13], %s3689_s30  ;;  %s2783_s24 = sshll.u32 %s3526_s26, 7 }
  0x67   : > { %2899 = dma.hbm_to_vmem [thread:$0]  (!%p3703_p4), %s622_s5, 16, %s624_s14, %s4452_s27  }
  0x68   : > { %s4453_s7 = sld [smem:[#allocation48_spill]]  ;;  %s651_s25 = scalar_lea.vmem [#allocation17], %s2493_s17 }
  0x69   : > { %s659_s2 = sshll.u32 %s651_s25, 4  ;;  %s4454_s15 = smov 8   ;;  %s660_s2 = int_to_ptr.vmem [resolvable:$true] %s659_s2 }
  0x6a   : > { %s4455_s11 = smov 128   ;;  %s4456_s29 = scalar_lea.sflag [#allocation16], %s3689_s30 }
  0x6b   : > { %s4457_s5 = sld [smem:[#allocation50_spill]]  ;;  %s680_s26 = scalar_lea.vmem [#allocation18], %s2493_s17 }
  0x6c   : > { %s688_s20 = sshll.u32 %s680_s26, 4  ;;  %s677_s23 = scalar_lea.sflag [#allocation19], %s3694_s16  ;;  %s689_s20 = int_to_ptr.vmem [resolvable:$true] %s688_s20 }
  0x6d   : > { %s4458_s0 = smov 4  }
  0x6e   : > { %s656_s8 = scalar_lea.hbm %s4453_s7, %s2783_s24  ;;  %s4459_s7 = smov 64  }
  0x6f   : > { %s657_s4 = sshll.u32 %s656_s8, 4  ;;  %706 = sbr.rel (%p3714_p7) target bundleno = 2715 (0xa9b), region = 80  ;;  %s658_s4 = int_to_ptr.hbm [resolvable:$true] %s657_s4 }
  0x70   : > { %2905 = dma.hbm_to_vmem [thread:$0]  (!%p3703_p4), %s658_s4, 2048, %s660_s2, %s4456_s29, %s4455_s11, %s4455_s11, %s4454_s15  }
  0x71   : > { %s685_s14 = scalar_lea.hbm %s4457_s5, %s2783_s24  ;;  %s3880_s4 = sand.u32 (!%p3714_p7), 1, %s3510_s22  }
  0x72   : > { %s686_s27 = sshll.u32 %s685_s14, 4  ;;  %s2500_s30 = sshll.u32 (!%p3714_p7), %s3880_s4, 4  ;;  %s687_s27 = int_to_ptr.hbm [resolvable:$true] %s686_s27 }
  0x73   : > { %2908 = dma.hbm_to_vmem [thread:$0]  (!%p3703_p4), %s687_s27, 2048, %s689_s20, %s677_s23, %s4459_s7, %s4459_s7, %s4458_s0  }
  0x74   : > { %s709_s26 = scalar_lea.sflag [#allocation4], %s3880_s4  ;;  %s3886_s18 = scalar_lea.vmem [#allocation3], %s2500_s30 }
  0x75   : > { %3465 = dma.done.wait (%p3784_p3), %s709_s26, 256  }
  0x76   : > { %3467 = vsyncadd (%p3784_p3), %s709_s26, 4294967040  ;;  %s718_s12 = sand.u32 1, %s3752_s6   ;;  %s3894_s20 = sand.u32 1, %s3498_s19  }
  0x77   : > { %s719_s16 = scalar_lea.sflag [#allocation7], %s718_s12 }
  0x78   : > { %3469 = dma.done.wait (%p3790_p5), %s719_s16, 32  }
  0x79   : > { %3471 = vsyncadd (%p3790_p5), %s719_s16, 4294967264  ;;  %s2854_s24 = smul.u32 192, %s3894_s20  ;;  %s737_s25 = scalar_lea.sflag [#allocation10], %s718_s12 }
  0x7b   : > { %s3903_s2 = scalar_lea.vmem [#allocation9], %s2854_s24 }
  0x7c   : > { %3473 = dma.done.wait (%p3790_p5), %s737_s25, 3120  }
  0x7d   : > { %3475 = vsyncadd (%p3790_p5), %s737_s25, 4294964176  ;;  %s2855_s6 = smul.u32 3, %s3894_s20  ;;  %s2501_s15 = sshll.u32 %s3894_s20, 6 }
  0x7e   : > { %s757_s29 = scalar_lea.sflag [#allocation13], %s718_s12  ;;  %s3913_s13 = scalar_lea.vmem [#allocation12], %s2501_s15 }
  0x7f   : > { %s3911_s11 = scalar_lea.vmem [#allocation11], %s2855_s6 }
  0x80   : > { %3477 = dma.done.wait (%p3790_p5), %s757_s29, 1040  }
  0x81   : > { %3479 = vsyncadd (%p3790_p5), %s757_s29, 4294966256  ;;  %s776_s14 = scalar_lea.sflag [#allocation16], %s718_s12 }
  0x82   : > { %3481 = dma.done.wait (%p3790_p5), %s776_s14, 2064  }
  0x83   : > { %3483 = vsyncadd (%p3790_p5), %s776_s14, 4294965232  ;;  %s2502_s23 = sshll.u32 %s3894_s20, 7  ;;  %s795_s7 = scalar_lea.sflag [#allocation19], %s3894_s20 }
  0x84   : > { %s3926_s0 = scalar_lea.vmem [#allocation17], %s2502_s23  ;;  %s3929_s8 = scalar_lea.vmem [#allocation18], %s2502_s23 }
  0x85   : > { %3485 = dma.done.wait (%p3790_p5), %s795_s7, 2048  }
  0x86   : > { %3487 = vsyncadd (%p3790_p5), %s795_s7, 4294965248  ;;  %s4461_s26 = sld [smem:[#allocation30_spill]]  ;;  %s3955_s17 = scalar_lea.vmem [#allocation20], %s2500_s30 }
  0x87   : > { %s4462_s25 = sld [smem:[#allocation45_spill]] }
  0x88   : > { %s4463_s23 = sld [smem:[#allocation49_spill]] }
  0x89   : > { %s4464_s5 = sld [smem:[#allocation51_spill]] }
  0x8c   : > { %p897_p4 = scmp.lt.s32.totalorder %s4461_s26, 1  ;;  %p2506_p7 = scmp.ne.s32.totalorder %s4461_s26, 0 }
  0x8e   : > { %s3937_s12 = scalar_select %p897_p4, %s4461_s26, 1 }
  0x8f   : > { %911 = sbr.rel (%p2506_p7) target bundleno = 151 (0x97), region = 124 }
  0x90   : > { %s899_s6 = scalar_lea.vmem %s4462_s25, %s3937_s12  ;;  %s2505_s15 = sshll.u32 %s3937_s12, 1 }
  0x91   : > { %s3947_s27 = scalar_lea.vmem %s4463_s23, %s2505_s15  ;;  %s906_s1 = scalar_lea.vmem %s4464_s5, %s3937_s12 }
  0x94   : > { %v912_v0 = vld [vmem:[%s3886_s18] sm:$0xff]  ;;  %v913_v1 = vld [vmem:[%s3886_s18 + $0x8] sm:$0xff] }
  0x95   : > { %914 = vst [vmem:[#allocation2] sm:$0xff] %v912_v0 }
  0x96   : > { %915 = vst [vmem:[#allocation2 + $0x8] sm:$0xff] %v913_v1 }
  0x97 PF: > { %v3542_v4 = vmov 128.0   ;;  %v2593_v19 = vld [vmem:[%s3903_s2 + $0xa8] sm:$0xf]  ;;  %v2807_v20 = vld [vmem:[%s3903_s2 + $0xb0] sm:$0xf0]  ;;  %s4465_s30 = scalar_lea.vmem [#allocation6], %s3894_s20 }
  0x98   : > { %3036 = vrcp.f32 %v3542_v4  ;;  %v2806_v21 = vld [vmem:[%s3903_s2 + $0xac] sm:$0xf]  ;;  %v2594_v22 = vor.u32 %v2807_v20, %v2593_v19  ;;  %v2595_v23 = vld [vmem:[%s3903_s2 + $0xb4] sm:$0xf0]  ;;  %v2601_v24 = vld [vmem:[%s3903_s2 + $0xb0] sm:$0xf] }
  0x99   : > { %v2808_v25 = vld [vmem:[%s3903_s2 + $0xb8] sm:$0xf0]  ;;  %v2598_v26 = vor.u32 %v2806_v21, %v2595_v23  ;;  %v2581_v28 = vld [vmem:[%s3903_s2 + $0x90] sm:$0xf]  ;;  %v2803_v30 = vld [vmem:[%s3903_s2 + $0x94] sm:$0xf] }
  0x9a   : > { %v2602_v27 = vor.u32 %v2808_v25, %v2601_v24  ;;  %1146 = vmatpush.bf16.msra.mxu0 %v2594_v22  ;;  %v2804_v29 = vld [vmem:[%s3903_s2 + $0x98] sm:$0xf0]  ;;  %v2583_v32 = vld [vmem:[%s3903_s2 + $0x9c] sm:$0xf0]  ;;  %v2589_v33 = vld [vmem:[%s3903_s2 + $0x98] sm:$0xf] }
  0x9b   : > { %1160 = vmatpush.bf16.msra.mxu1 %v2598_v26  ;;  %v2582_v31 = vor.u32 %v2804_v29, %v2581_v28  ;;  %v2805_v34 = vld [vmem:[%s3903_s2 + $0xa0] sm:$0xf0]  ;;  %v2586_v35 = vor.u32 %v2803_v30, %v2583_v32  ;;  %v2569_v37 = vld [vmem:[%s3903_s2 + $0x78] sm:$0xf]  ;;  %v2800_v39 = vld [vmem:[%s3903_s2 + $0x7c] sm:$0xf] }
  0x9c   : > { %v3960_v2 = vld [vmem:[#allocation2] sm:$0xff]  ;;  %1174 = vmatpush.bf16.msra.mxu2 %v2602_v27  ;;  %v2590_v36 = vor.u32 %v2805_v34, %v2589_v33  ;;  %v2801_v38 = vld [vmem:[%s3903_s2 + $0x80] sm:$0xf0]  ;;  %v2571_v41 = vld [vmem:[%s3903_s2 + $0x84] sm:$0xf0]  ;;  %s4466_s18 = scalar_lea.vmem [#allocation8], %s3894_s20 }
  0x9d   : > { %920 = vadd.xlane.f32.xlu0 %v3960_v2  ;;  %v3963_v3 = vld [vmem:[#allocation2 + $0x8] sm:$0xff]  ;;  %v2570_v40 = vor.u32 %v2801_v38, %v2569_v37  ;;  %v2577_v42 = vld [vmem:[%s3903_s2 + $0x80] sm:$0xf]  ;;  %v2802_v43 = vld [vmem:[%s3903_s2 + $0x88] sm:$0xf0]  ;;  %v2574_v44 = vor.u32 %v2800_v39, %v2571_v41  ;;  %vm1200_vm7 = vcmask 261120  }
  0x9e   : > { %v3037_v5 = vpop.eup %3036  ;;  %1147 = vmatpush.bf16.msra.mxu0 %v2582_v31  ;;  %v2578_v45 = vor.u32 %v2802_v43, %v2577_v42  ;;  %v2557_v46 = vld [vmem:[%s3903_s2 + $0x60] sm:$0xf]  ;;  %v2798_v47 = vld [vmem:[%s3903_s2 + $0x68] sm:$0xf0]  ;;  %v2797_v48 = vld [vmem:[%s3903_s2 + $0x64] sm:$0xf] }
  0x9f   : > { %v925_v6 = vmul.f32 128.0, %v3037_v5  ;;  %vm929_vm0 = vweird.f32 %v3037_v5  ;;  %1161 = vmatpush.bf16.msra.mxu1 %v2586_v35  ;;  %v2558_v49 = vor.u32 %v2798_v47, %v2557_v46  ;;  %v2559_v50 = vld [vmem:[%s3903_s2 + $0x6c] sm:$0xf0]  ;;  %v2565_v51 = vld [vmem:[%s3903_s2 + $0x68] sm:$0xf]  ;;  %vm1221_vm8 = vcmask 130048  }
  0xa0   : > { %1175 = vmatpush.bf16.msra.mxu2 %v2590_v36  ;;  %v2799_v52 = vld [vmem:[%s3903_s2 + $0x70] sm:$0xf0]  ;;  %v2562_v53 = vor.u32 %v2797_v48, %v2559_v50  ;;  %v2545_v55 = vld [vmem:[%s3903_s2 + $0x48] sm:$0xf]  ;;  %v2794_v57 = vld [vmem:[%s3903_s2 + $0x4c] sm:$0xf] }
  0xa1   : > { %v926_v7 = vsub.f32 1.0, %v925_v6  ;;  %v2566_v54 = vor.u32 %v2799_v52, %v2565_v51  ;;  %v2795_v56 = vld [vmem:[%s3903_s2 + $0x50] sm:$0xf0]  ;;  %v2547_v59 = vld [vmem:[%s3903_s2 + $0x54] sm:$0xf0]  ;;  %s3545_s5 = smov 64  }
  0xa2   : > { %1148 = vmatpush.bf16.msra.mxu0 %v2570_v40  ;;  %v2546_v58 = vor.u32 %v2795_v56, %v2545_v55  ;;  %v2553_v60 = vld [vmem:[%s3903_s2 + $0x50] sm:$0xf]  ;;  %v2796_v61 = vld [vmem:[%s3903_s2 + $0x58] sm:$0xf0]  ;;  %v2550_v62 = vor.u32 %v2794_v57, %v2547_v59  ;;  %v2791_v4 = vld [vmem:[%s3903_s2 + $0x34] sm:$0xf] }
  0xa3   : > { %v927_v8 = vmul.f32 %v3037_v5, %v926_v7  ;;  %1162 = vmatpush.bf16.msra.mxu1 %v2574_v44  ;;  %v2554_v63 = vor.u32 %v2796_v61, %v2553_v60  ;;  %v2533_v0 = vld [vmem:[%s3903_s2 + $0x30] sm:$0xf]  ;;  %v2792_v1 = vld [vmem:[%s3903_s2 + $0x38] sm:$0xf0]  ;;  %v2535_v6 = vld [vmem:[%s3903_s2 + $0x3c] sm:$0xf0] }
  0xa4   : > { %1176 = vmatpush.bf16.msra.mxu2 %v2578_v45  ;;  %v2541_v7 = vld [vmem:[%s3903_s2 + $0x38] sm:$0xf]  ;;  %v2529_v19 = vld [vmem:[%s3903_s2 + $0x20] sm:$0xf]  ;;  %v2790_v20 = vld [vmem:[%s3903_s2 + $0x28] sm:$0xf0] }
  0xa5   : > { %922 = vadd.xlane.f32.xlu0 %v3963_v3  ;;  %v928_v9 = vadd.f32 %v3037_v5, %v927_v8  ;;  %v2793_v8 = vld [vmem:[%s3903_s2 + $0x40] sm:$0xf0]  ;;  %v2530_v22 = vor.u32 %v2790_v20, %v2529_v19  ;;  %v2509_v23 = vld [vmem:[%s3903_s2] sm:$0xf]  ;;  %v2786_v24 = vld [vmem:[%s3903_s2 + $0x8] sm:$0xf0] }
  0xa6   : > { %1149 = vmatpush.bf16.msra.mxu0 %v2558_v49  ;;  %v2785_v25 = vld [vmem:[%s3903_s2 + $0x4] sm:$0xf]  ;;  %v2510_v27 = vor.u32 %v2786_v24, %v2509_v23  ;;  %v2511_v28 = vld [vmem:[%s3903_s2 + $0xc] sm:$0xf0]  ;;  %v2517_v29 = vld [vmem:[%s3903_s2 + $0x8] sm:$0xf] }
  0xa7   : > { %v3966_v10 = vsel %vm929_vm0, %v3037_v5, %v928_v9  ;;  %1163 = vmatpush.bf16.msra.mxu1 %v2562_v53  ;;  %v2534_v5 = vor.u32 %v2792_v1, %v2533_v0  ;;  %v2538_v9 = vor.u32 %v2791_v4, %v2535_v6  ;;  %v2787_v30 = vld [vmem:[%s3903_s2 + $0x10] sm:$0xf0]  ;;  %v2514_v32 = vor.u32 %v2785_v25, %v2511_v28  ;;  %v3030_v51 = vld [vmem:[%s4465_s30] ss:$0 sm:$0xff]  ;;  %s4469_s24 = scalar_lea.vmem [#allocation15], %s3894_s20  ;;  %s4473_s25 = sld [smem:[#allocation30_spill]] }
  0xa8   : > { %1177 = vmatpush.bf16.msra.mxu2 %v2566_v54  ;;  %v2518_v33 = vor.u32 %v2787_v30, %v2517_v29  ;;  %v3031_v56 = vld [vmem:[%s4466_s18] ss:$0 sm:$0xff]  ;;  %vm1495_vm9 = vcmask 523264   ;;  %vm1498_vm10 = vcmask 785408  }
  0xaa   : > { %1150 = vmatpush.bf16.msra.mxu0 %v2546_v58 }
  0xab   : > { %1164 = vmatpush.bf16.msra.mxu1 %v2550_v62 }
  0xac   : > { %1178 = vmatpush.bf16.msra.mxu2 %v2554_v63 }
  0xad   : > { %p2775_p10 = scmp.ne.s32.totalorder %s4473_s25, 1 }
  0xae   : > { %1151 = vmatpush.bf16.msra.mxu0 %v2534_v5  ;;  %s4475_s14 = sld [smem:[#allocation53_spill]] (!%p2775_p10) }
  0xaf   : > { %1165 = vmatpush.bf16.msra.mxu1 %v2538_v9 }
 0x110   : > { %v921_v11 = vpop.xlane.xlu0 %920 }
 0x111   : > { %v931_v12 = vmul.f32 %v3966_v10, %v921_v11  ;;  %v2542_v11 = vor.u32 %v2793_v8, %v2541_v7 }
 0x113   : > { %v3970_v13 = vsub.f32 %v3960_v2, %v931_v12  ;;  %1179 = vmatpush.bf16.msra.mxu2 %v2542_v11  ;;  %v2521_v12 = vld [vmem:[%s3903_s2 + $0x18] sm:$0xf] }
 0x115   : > { %v935_v14 = vmul.f32 %v3970_v13, %v3970_v13 }
 0x117   : > { %937 = vadd.xlane.f32.xlu1 %v935_v14  ;;  %v2789_v14 = vld [vmem:[%s3903_s2 + $0x20] sm:$0xf0]  ;;  %1180 = vmatpush.bf16.msra.mxu2 %v2530_v22 }
 0x118   : > { %v923_v15 = vpop.xlane.xlu0 %922 }
 0x119   : > { %v932_v16 = vmul.f32 %v3966_v10, %v923_v15  ;;  %v2788_v15 = vld [vmem:[%s3903_s2 + $0x1c] sm:$0xf] }
 0x11b   : > { %v3976_v17 = vsub.f32 %v3963_v3, %v932_v16  ;;  %v2522_v16 = vor.u32 %v2789_v14, %v2521_v12  ;;  %1181 = vmatpush.bf16.msra.mxu2 %v2518_v33 }
 0x11d   : > { %v936_v18 = vmul.f32 %v3976_v17, %v3976_v17  ;;  %1152 = vmatpush.bf16.msra.mxu0 %v2522_v16 }
 0x11f   : > { %939 = vadd.xlane.f32.xlu1 %v936_v18  ;;  %v2523_v18 = vld [vmem:[%s3903_s2 + $0x24] sm:$0xf0]  ;;  %s3543_s2 = smov 96  }
 0x120   : > { %v2526_v21 = vor.u32 %v2788_v15, %v2523_v18 }
 0x121   : > { %1153 = vmatpush.bf16.msra.mxu0 %v2510_v27 }
 0x122   : > { %1166 = vmatpush.bf16.msra.mxu1 %v2526_v21 }
 0x126   : > { %1167 = vmatpush.bf16.msra.mxu1 %v2514_v32 }
 0x18a   : > { %v938_v26 = vpop.xlane.xlu1 %937 }
 0x18b   : > { %v941_v31 = vmul.f32 %v938_v26, %v3966_v10 }
 0x18d   : > { %v943_v34 = vadd.f32 1e-06, %v941_v31 }
 0x18f   : > { %3038 = vrsqrt.f32 %v943_v34  ;;  %vm951_vm2 = vweird.f32 %v943_v34 }
 0x192   : > { %v940_v35 = vpop.xlane.xlu1 %939 }
 0x193   : > { %v942_v36 = vmul.f32 %v940_v35, %v3966_v10 }
 0x195   : > { %v3039_v37 = vpop.eup %3038  ;;  %v944_v38 = vadd.f32 1e-06, %v942_v36 }
 0x196   : > { %v946_v39 = vmul.f32 %v3039_v37, %v943_v34  ;;  %vm952_vm1 = vweird.f32 %v3039_v37 }
 0x197   : > { %3040 = vrsqrt.f32 %v944_v38  ;;  %vm953_vm3 = vmor %vm951_vm2, %vm952_vm1  ;;  %vm961_vm5 = vweird.f32 %v944_v38 }
 0x198   : > { %v947_v40 = vmul.f32 %v3039_v37, %v946_v39 }
 0x19a   : > { %v948_v41 = vmul.f32 0.5, %v947_v40 }
 0x19c   : > { %v949_v42 = vsub.f32 1.5, %v948_v41 }
 0x19d   : > { %v3041_v43 = vpop.eup %3040 }
 0x19e   : > { %v950_v44 = vmul.f32 %v3039_v37, %v949_v42  ;;  %v956_v45 = vmul.f32 %v3041_v43, %v944_v38  ;;  %vm962_vm4 = vweird.f32 %v3041_v43 }
 0x19f   : > { %vm963_vm6 = vmor %vm961_vm5, %vm962_vm4 }
 0x1a0   : > { %v957_v46 = vmul.f32 %v3041_v43, %v956_v45  ;;  %v954_v47 = vsel %vm953_vm3, %v3039_v37, %v950_v44 }
 0x1a1   : > { %v965_v50 = vmul.f32 %v954_v47, %v3970_v13  ;;  %v1010_v13 = vld [vmem:[%s3911_s11] sm:$0x7]  ;;  %s3544_s11 = smov 32  }
 0x1a2   : > { %v958_v48 = vmul.f32 0.5, %v957_v46  ;;  %v1012_v63 = vperm.slane %v1010_v13, 0  ;;  %v1013_v0 = vperm.slane %v1010_v13, 1  ;;  %v1014_v6 = vperm.slane %v1010_v13, 2 }
 0x1a3   : > { %v970_v55 = vmul.f32 %v3030_v51, %v965_v50 }
 0x1a4   : > { %v959_v49 = vsub.f32 1.5, %v958_v48 }
 0x1a5   : > { %v975_v58 = vadd.f32 %v3031_v56, %v970_v55 }
 0x1a6   : > { %v960_v52 = vmul.f32 %v3041_v43, %v959_v49 }
 0x1a8   : > { %v964_v53 = vsel %vm963_vm6, %v3041_v43, %v960_v52 }
 0x1a9   : > { %v966_v54 = vmul.f32 %v964_v53, %v3976_v17 }
 0x1ab   : > { %v971_v57 = vmul.f32 %v3030_v51, %v966_v54 }
 0x1ad   : > { %v976_v59 = vadd.f32 %v3031_v56, %v971_v57 }
 0x1af   : > { %v977_v60 = vpack.c.bf16 %v976_v59, %v975_v58 }
 0x1b1   : > { %1154 = vmatmul.bf16.vlgmr.msra.gmra.mxu0 %v977_v60  ;;  %1168 = vmatmul.bf16.vlgmr.msra.gmra.mxu1 %v977_v60 }
 0x1b2   : > { %1182 = vmatmul.bf16.vlgmr.msra.gmra.mxu2 %v977_v60 }
 0x22e   : > { %v1155_v61 = vpop.f32.mrf.mxu0  ;;  %v1169_v62 = vpop.f32.mrf.mxu1 }
 0x22f   : > { %v1156_v1 = vadd.f32 %v1155_v61, %v1012_v63  ;;  %v1170_v4 = vadd.f32 %v1169_v62, %v1013_v0 }
 0x231   : > { %v1188_v8 = vpack.c.bf16 %v1170_v4, %v1156_v1 }
 0x233   : > { %v1194_v15 = vunpack.c.l.b16 %v1188_v8  ;;  %v1197_v16 = vunpack.c.h.b16 %v1188_v8 }
 0x235   : > { %v1183_v5 = vpop.f32.mrf.mxu2 }
 0x236   : > { %v1157_v17 = vpop.f32.mrf.mxu0  ;;  %v1171_v7 = vpop.f32.mrf.mxu1  ;;  %v1184_v14 = vadd.f32 %v1183_v5, %v1014_v6 }
 0x237   : > { %v1158_v9 = vadd.f32 %v1157_v17, %v1012_v63  ;;  %v1172_v11 = vadd.f32 %v1171_v7, %v1013_v0 }
 0x238   : > { %v1189_v23 = vpack.c.bf16 %v1184_v14, %v1184_v14 }
 0x239   : > { %v1190_v12 = vpack.c.bf16 %v1172_v11, %v1158_v9 }
 0x23a   : > { %v1247_v27 = vunpack.c.l.b16 %v1189_v23 }
 0x23b   : > { %v1195_v18 = vunpack.c.l.b16 %v1190_v12  ;;  %v1198_v19 = vunpack.c.h.b16 %v1190_v12 }
 0x23d   : > { %v1196_v20 = vpack.c.b16 %v1195_v18, %v1194_v15  ;;  %v1199_v21 = vpack.c.b16 %v1198_v19, %v1197_v16  ;;  %v1185_v22 = vpop.f32.mrf.mxu2 }
 0x23e   : > { %v1186_v24 = vadd.f32 %v1185_v22, %v1014_v6 }
 0x23f   : > { %1268 = vrot.lane.b32.xlu0 %v1196_v20, %s3543_s2  ;;  %v1205_v25 = vsel %vm1200_vm7, %v1199_v21, 0 }
 0x240   : > { %v1191_v26 = vpack.c.bf16 %v1186_v24, %v1186_v24  ;;  %1214 = vmatpush.bf16.xpose.msra.mxu3 %v1205_v25 }
 0x242   : > { %v1248_v28 = vunpack.c.l.b16 %v1191_v26 }
 0x244   : > { %v4039_v29 = vpack.c.b16 %v1248_v28, %v1247_v27 }
 0x247   : > { %2603 = vmatmul.msk.bf16.vlgmr.msra.gmra.mxu3 %vm1200_vm7, %v1196_v20 }
 0x248   : > { %1261 = vmatpush.bf16.msrb.mxu3 %v4039_v29 }
 0x2b1   : > { %v1269_v46 = vpop.permute.xlu0 %1268 }
 0x2ca   : > { %v1216_v30 = vpop.f32.mrf.mxu3 }
 0x2cb   : > { %v1222_v31 = vsel %vm1221_vm8, %v1216_v30, -inf }
 0x2cc   : > { %1223 = vmax.xlane.f32.xlu2 %v1222_v31 }
 0x2d2   : > { %v1218_v32 = vpop.f32.mrf.mxu3 }
 0x2d3   : > { %v1225_v33 = vsel %vm1221_vm8, %v1218_v32, -inf }
 0x2d4   : > { %1226 = vmax.xlane.f32.xlu2 %v1225_v33 }
 0x2ec   : > { %1270 = vrot.lane.b32.xlu2 %v1199_v21, %s3543_s2 }
 0x2f4   : > { %1404 = vrot.lane.b32.xlu2 %v1199_v21, %s3544_s11 }
 0x2fc   : > { %1402 = vrot.lane.b32.xlu2 %v1196_v20, %s3544_s11 }
 0x33f   : > { %v1224_v34 = vpop.xlane.xlu2 %1223 }
 0x340   : > { %v1228_v35 = vsub.f32 %v1216_v30, %v1224_v34 }
 0x342   : > { %v1230_v36 = vmul.f32 1.442695, %v1228_v35 }
 0x344   : > { %3042 = vpow2.f32 %v1230_v36 }
 0x347   : > { %v1227_v37 = vpop.xlane.xlu2 %1226 }
 0x348   : > { %v1229_v38 = vsub.f32 %v1218_v32, %v1227_v37 }
 0x34a   : > { %v3043_v39 = vpop.eup %3042  ;;  %v1232_v40 = vmul.f32 1.442695, %v1229_v38 }
 0x34b   : > { %v1234_v41 = vsel %vm1221_vm8, %v3043_v39, 0.0 }
 0x34c   : > { %3044 = vpow2.f32 %v1232_v40  ;;  %1235 = vadd.xlane.f32.xlu0 %v1234_v41 }
 0x34f   : > { %v1271_v42 = vpop.permute.xlu2 %1270 }
 0x350   : > { %v1276_v43 = vsel %vm1200_vm7, %v1271_v42, 0 }
 0x351   : > { %1285 = vmatpush.bf16.xpose.msra.mxu3 %v1276_v43 }
 0x352   : > { %v3045_v44 = vpop.eup %3044 }
 0x353   : > { %v1237_v45 = vsel %vm1221_vm8, %v3045_v44, 0.0 }
 0x354   : > { %1238 = vadd.xlane.f32.xlu1 %v1237_v45 }
 0x357   : > { %v1405_v53 = vpop.permute.xlu2 %1404 }
 0x358   : > { %v1410_v55 = vsel %vm1200_vm7, %v1405_v53, 0 }
 0x35f   : > { %v1403_v59 = vpop.permute.xlu2 %1402 }
 0x360   : > { %1335 = vrot.lane.b32.xlu0 %v1196_v20, %s3545_s5 }
 0x36d   : > { %1337 = vrot.lane.b32.xlu1 %v1199_v21, %s3545_s5 }
 0x3bf   : > { %v1236_v47 = vpop.xlane.xlu0 %1235 }
 0x3c0   : > { %3046 = vrcp.f32 %v1236_v47 }
 0x3c6   : > { %v3047_v49 = vpop.eup %3046 }
 0x3c7   : > { %v1239_v48 = vpop.xlane.xlu1 %1238  ;;  %v1242_v51 = vmul.f32 %v3047_v49, %v3043_v39 }
 0x3c8   : > { %3048 = vrcp.f32 %v1239_v48 }
 0x3ce   : > { %v3049_v50 = vpop.eup %3048 }
 0x3cf   : > { %v1243_v52 = vmul.f32 %v3049_v50, %v3045_v44 }
 0x3d1   : > { %v1244_v54 = vpack.c.bf16 %v1243_v52, %v1242_v51 }
 0x3d2   : > { %v1336_v58 = vpop.permute.xlu0 %1335 }
 0x3d3   : > { %2604 = vmatmul.msk.bf16.vlgmr.msrb.gmra.mxu3 %vm1221_vm8, %v1244_v54 }
 0x3d4   : > { %1419 = vmatpush.bf16.xpose.msrb.mxu3 %v1410_v55 }
 0x3df   : > { %v1338_v56 = vpop.permute.xlu1 %1337 }
 0x3e0   : > { %v1343_v57 = vsel %vm1200_vm7, %v1338_v56, 0 }
 0x3e1   : > { %1352 = vmatpush.bf16.xpose.msrb.mxu2 %v1343_v57 }
 0x3e3   : > { %2605 = vmatmul.msk.bf16.vlgmr.msra.gmra.mxu3 %vm1200_vm7, %v1269_v46 }
 0x3e8   : > { %2607 = vmatmul.msk.bf16.vlgmr.msrb.gmra.mxu2 %vm1200_vm7, %v1336_v58 }
 0x3f3   : > { %2609 = vmatmul.msk.bf16.vlgmr.msrb.gmra.mxu3 %vm1200_vm7, %v1403_v59 }
 0x456   : > { %v4059_v60 = vpop.f32.mrf.mxu3 }
 0x45e   : > { %v4061_v13 = vpop.f32.mrf.mxu3 }
 0x466   : > { %v1287_v61 = vpop.f32.mrf.mxu3 }
 0x467   : > { %v1292_v62 = vsel %vm1221_vm8, %v1287_v61, -inf }
 0x468   : > { %1293 = vmax.xlane.f32.xlu1 %v1292_v62 }
 0x46b   : > { %v1354_v63 = vpop.f32.mrf.mxu2 }
 0x46c   : > { %v1359_v0 = vsel %vm1221_vm8, %v1354_v63, -inf }
 0x46d   : > { %1360 = vmax.xlane.f32.xlu2 %v1359_v0 }
 0x46e   : > { %v1289_v1 = vpop.f32.mrf.mxu3 }
 0x46f   : > { %v1295_v4 = vsel %vm1221_vm8, %v1289_v1, -inf }
 0x470   : > { %1296 = vmax.xlane.f32.xlu0 %v1295_v4 }
 0x473   : > { %v1356_v5 = vpop.f32.mrf.mxu2 }
 0x474   : > { %v1362_v6 = vsel %vm1221_vm8, %v1356_v5, -inf }
 0x475   : > { %1363 = vmax.xlane.f32.xlu1 %v1362_v6 }
 0x476   : > { %v1421_v17 = vpop.f32.mrf.mxu3 }
 0x477   : > { %v1426_v7 = vsel %vm1221_vm8, %v1421_v17, -inf }
 0x478   : > { %1427 = vmax.xlane.f32.xlu0 %v1426_v7  ;;  %v2815_v7 = vld [vmem:[%s3913_s13 + $0x30] sm:$0xff] }
 0x47e   : > { %v1423_v8 = vpop.f32.mrf.mxu3 }
 0x47f   : > { %v1429_v9 = vsel %vm1221_vm8, %v1423_v8, -inf }
 0x480   : > { %1430 = vmax.xlane.f32.xlu2 %v1429_v9  ;;  %v2814_v9 = vld [vmem:[%s3913_s13 + $0x28] sm:$0xff] }
 0x498   : > { %1315 = vrot.lane.b32.xlu2 %v4039_v29, %s3543_s2 }
 0x4db   : > { %v1294_v11 = vpop.xlane.xlu1 %1293 }
 0x4dc   : > { %v1298_v15 = vsub.f32 %v1287_v61, %v1294_v11 }
 0x4de   : > { %v1300_v19 = vmul.f32 1.442695, %v1298_v15 }
 0x4e0   : > { %v1361_v12 = vpop.xlane.xlu2 %1360 }
 0x4e1   : > { %v1365_v14 = vsub.f32 %v1354_v63, %v1361_v12 }
 0x4e3   : > { %v1367_v16 = vmul.f32 1.442695, %v1365_v14  ;;  %v1297_v18 = vpop.xlane.xlu0 %1296 }
 0x4e4   : > { %v1299_v22 = vsub.f32 %v1289_v1, %v1297_v18 }
 0x4e5   : > { %3050 = vpow2.f32 %v1367_v16 }
 0x4e6   : > { %3052 = vpow2.f32 %v1300_v19  ;;  %v1302_v28 = vmul.f32 1.442695, %v1299_v22  ;;  %v2811_v22 = vld [vmem:[%s3913_s13 + $0x10] sm:$0xff] }
 0x4e8   : > { %v1364_v20 = vpop.xlane.xlu1 %1363 }
 0x4e9   : > { %v1366_v21 = vsub.f32 %v1356_v5, %v1364_v20  ;;  %v2813_v20 = vld [vmem:[%s3913_s13 + $0x20] sm:$0xff] }
 0x4eb   : > { %v3051_v23 = vpop.eup %3050  ;;  %v1369_v24 = vmul.f32 1.442695, %v1366_v21  ;;  %v1428_v25 = vpop.xlane.xlu0 %1427  ;;  %v2812_v21 = vld [vmem:[%s3913_s13 + $0x18] sm:$0xff] }
 0x4ec   : > { %v1432_v26 = vsub.f32 %v1421_v17, %v1428_v25  ;;  %v1371_v27 = vsel %vm1221_vm8, %v3051_v23, 0.0  ;;  %v3053_v31 = vpop.eup %3052  ;;  %v2816_v17 = vld [vmem:[%s3913_s13 + $0x38] sm:$0xff] }
 0x4ed   : > { %3054 = vpow2.f32 %v1369_v24  ;;  %1372 = vadd.xlane.f32.xlu1 %v1371_v27  ;;  %v1304_v36 = vsel %vm1221_vm8, %v3053_v31, 0.0  ;;  %1566 = vmatpush.bf16.msrb.mxu1 %v2816_v17  ;;  %v2809_v24 = vld [vmem:[%s3913_s13] sm:$0xff] }
 0x4ee   : > { %v1434_v30 = vmul.f32 1.442695, %v1432_v26  ;;  %3056 = vpow2.f32 %v1302_v28  ;;  %v2687_v17 = vld [vmem:[%s3926_s0 + $0x58] sm:$0xf0] }
 0x4f0   : > { %3058 = vpow2.f32 %v1434_v30 }
 0x4f1   : > { %1567 = vmatpush.bf16.msrb.mxu1 %v2815_v7 }
 0x4f3   : > { %v3055_v32 = vpop.eup %3054  ;;  %v1431_v33 = vpop.xlane.xlu2 %1430 }
 0x4f4   : > { %v1433_v34 = vsub.f32 %v1423_v8, %v1431_v33  ;;  %v1374_v35 = vsel %vm1221_vm8, %v3055_v32, 0.0  ;;  %v3057_v38 = vpop.eup %3056 }
 0x4f5   : > { %1375 = vadd.xlane.f32.xlu0 %v1374_v35  ;;  %1305 = vadd.xlane.f32.xlu1 %v1304_v36  ;;  %v1307_v41 = vsel %vm1221_vm8, %v3057_v38, 0.0 }
 0x4f6   : > { %v1436_v37 = vmul.f32 1.442695, %v1433_v34  ;;  %v3059_v39 = vpop.eup %3058  ;;  %1568 = vmatpush.bf16.msrb.mxu1 %v2814_v9  ;;  %v2826_v9 = vld [vmem:[%s3926_s0 + $0x44] sm:$0xf0] }
 0x4f7   : > { %v1438_v42 = vsel %vm1221_vm8, %v3059_v39, 0.0 }
 0x4f8   : > { %3060 = vpow2.f32 %v1436_v37 }
 0x4fa   : > { %1569 = vmatpush.bf16.msrb.mxu1 %v2813_v20 }
 0x4fb   : > { %v1316_v40 = vpop.permute.xlu2 %1315 }
 0x4fc   : > { %1328 = vmatpush.bf16.msrb.mxu0 %v1316_v40 }
 0x4fd   : > { %1308 = vadd.xlane.f32.xlu0 %v1307_v41  ;;  %1439 = vadd.xlane.f32.xlu1 %v1438_v42 }
 0x4fe   : > { %v3061_v43 = vpop.eup %3060  ;;  %1570 = vmatpush.bf16.msrb.mxu1 %v2812_v21  ;;  %v2671_v21 = vld [vmem:[%s3926_s0 + $0x38] sm:$0xf0] }
 0x4ff   : > { %v1441_v44 = vsel %vm1221_vm8, %v3061_v43, 0.0 }
 0x502   : > { %1571 = vmatpush.bf16.msrb.mxu1 %v2811_v22 }
 0x505   : > { %1442 = vadd.xlane.f32.xlu0 %v1441_v44 }
 0x516   : > { %1382 = vrot.lane.b32.xlu1 %v4039_v29, %s3545_s5 }
 0x519   : > { %1449 = vrot.lane.b32.xlu0 %v4039_v29, %s3544_s11 }
 0x560   : > { %v1373_v45 = vpop.xlane.xlu1 %1372 }
 0x568   : > { %v1376_v46 = vpop.xlane.xlu0 %1375  ;;  %v1306_v47 = vpop.xlane.xlu1 %1305 }
 0x569   : > { %3062 = vrcp.f32 %v1306_v47 }
 0x56f   : > { %v3063_v49 = vpop.eup %3062 }
 0x570   : > { %v1309_v48 = vpop.xlane.xlu0 %1308  ;;  %v1312_v51 = vmul.f32 %v3063_v49, %v3053_v31  ;;  %v1440_v55 = vpop.xlane.xlu1 %1439 }
 0x571   : > { %3064 = vrcp.f32 %v1309_v48 }
 0x572   : > { %3066 = vrcp.f32 %v1376_v46 }
 0x573   : > { %3068 = vrcp.f32 %v1373_v45 }
 0x577   : > { %v3065_v50 = vpop.eup %3064 }
 0x578   : > { %v1313_v52 = vmul.f32 %v3065_v50, %v3057_v38  ;;  %v1443_v54 = vpop.xlane.xlu0 %1442  ;;  %v3067_v29 = vpop.eup %3066 }
 0x579   : > { %3070 = vrcp.f32 %v1443_v54  ;;  %v3069_v56 = vpop.eup %3068  ;;  %v1380_v58 = vmul.f32 %v3067_v29, %v3055_v32  ;;  %v2832_v54 = vld [vmem:[%s3926_s0 + $0x74] sm:$0xf0] }
 0x57a   : > { %v1314_v53 = vpack.c.bf16 %v1313_v52, %v1312_v51  ;;  %3072 = vrcp.f32 %v1440_v55  ;;  %v1379_v61 = vmul.f32 %v3069_v56, %v3051_v23  ;;  %v2810_v23 = vld [vmem:[%s3913_s13 + $0x8] sm:$0xff]  ;;  %v2831_v55 = vld [vmem:[%s3926_s0 + $0x74] sm:$0xf]  ;;  %v2703_v56 = vld [vmem:[%s3926_s0 + $0x78] sm:$0xf0] }
 0x57b   : > { %1572 = vmatpush.bf16.msrb.mxu1 %v2810_v23  ;;  %v2661_v23 = vld [vmem:[%s3926_s0 + $0x20] sm:$0xf] }
 0x57c   : > { %2606 = vmatmul.msk.bf16.vlgmr.msrb.gmra.mxu0 %vm1221_vm8, %v1314_v53  ;;  %v1381_v0 = vpack.c.bf16 %v1380_v58, %v1379_v61  ;;  %v2701_v53 = vld [vmem:[%s3926_s0 + $0x70] sm:$0xf]  ;;  %v2693_v58 = vld [vmem:[%s3926_s0 + $0x60] sm:$0xf]  ;;  %v2829_v61 = vld [vmem:[%s3926_s0 + $0x64] sm:$0xf] }
 0x57d   : > { %v2702_v29 = vor.u32 %v2832_v54, %v2701_v53 }
 0x57f   : > { %v3071_v57 = vpop.eup %3070  ;;  %1573 = vmatpush.bf16.msrb.mxu1 %v2809_v24  ;;  %v2822_v24 = vld [vmem:[%s3926_s0 + $0x24] sm:$0xf0] }
 0x580   : > { %v3073_v59 = vpop.eup %3072  ;;  %v1447_v63 = vmul.f32 %v3071_v57, %v3061_v43  ;;  %v2706_v57 = vor.u32 %v2831_v55, %v2703_v56 }
 0x581   : > { %v1446_v1 = vmul.f32 %v3073_v59, %v3059_v39  ;;  %v2830_v59 = vld [vmem:[%s3926_s0 + $0x64] sm:$0xf0] }
 0x582   : > { %1757 = vmatpush.bf16.msra.mxu3 %v2706_v57 }
 0x583   : > { %v1448_v5 = vpack.c.bf16 %v1447_v63, %v1446_v1  ;;  %v2695_v63 = vld [vmem:[%s3926_s0 + $0x68] sm:$0xf0]  ;;  %v2685_v1 = vld [vmem:[%s3926_s0 + $0x50] sm:$0xf] }
 0x588   : > { %v1383_v62 = vpop.permute.xlu1 %1382 }
 0x589   : > { %1395 = vmatpush.bf16.msra.mxu2 %v1383_v62  ;;  %v2694_v62 = vor.u32 %v2830_v59, %v2693_v58 }
 0x58b   : > { %v1450_v4 = vpop.permute.xlu0 %1449 }
 0x58c   : > { %2608 = vmatmul.msk.bf16.vlgmr.msra.gmra.mxu2 %vm1221_vm8, %v1381_v0  ;;  %1462 = vmatpush.bf16.msra.mxu0 %v1450_v4  ;;  %v2698_v0 = vor.u32 %v2829_v61, %v2695_v63  ;;  %v2828_v4 = vld [vmem:[%s3926_s0 + $0x54] sm:$0xf0] }
 0x58d   : > { %1743 = vmatpush.bf16.msrb.mxu2 %v2702_v29 }
 0x58e   : > { %1758 = vmatpush.bf16.msra.mxu3 %v2698_v0 }
 0x58f   : > { %2610 = vmatmul.msk.bf16.vlgmr.msra.gmra.mxu0 %vm1221_vm8, %v1448_v5  ;;  %v2827_v5 = vld [vmem:[%s3926_s0 + $0x54] sm:$0xf] }
 0x590   : > { %v2690_v7 = vor.u32 %v2827_v5, %v2687_v17 }
 0x591   : > { %1744 = vmatpush.bf16.msrb.mxu2 %v2694_v62 }
 0x592   : > { %1759 = vmatpush.bf16.msra.mxu3 %v2690_v7 }
 0x5f9   : > { %v1330_v6 = vpop.f32.mrf.mxu0 }
 0x601   : > { %v1332_v11 = vpop.f32.mrf.mxu0 }
 0x602   : > { %v3020_v16 = vpack.i.bf16 %v1332_v11, %v1330_v6  ;;  %v2686_v6 = vor.u32 %v2828_v4, %v2685_v1  ;;  %v2825_v11 = vld [vmem:[%s3926_s0 + $0x44] sm:$0xf]  ;;  %v3034_v4 = vld [vmem:[%s4469_s24] ss:$0 sm:$0xff] }
 0x604   : > { %1745 = vmatpush.bf16.msrb.mxu2 %v2686_v6 }
 0x60c   : > { %v1464_v15 = vpop.f32.mrf.mxu0 }
 0x60f   : > { %v1397_v8 = vpop.f32.mrf.mxu2 }
 0x614   : > { %v1466_v18 = vpop.f32.mrf.mxu0 }
 0x615   : > { %v3025_v19 = vpack.i.bf16 %v1466_v18, %v1464_v15  ;;  %v2824_v18 = vld [vmem:[%s3926_s0 + $0x34] sm:$0xf0] }
 0x617   : > { %v1399_v12 = vpop.f32.mrf.mxu2 }
 0x618   : > { %v3015_v14 = vpack.i.bf16 %v1399_v12, %v1397_v8  ;;  %v2677_v8 = vld [vmem:[%s3926_s0 + $0x40] sm:$0xf] }
 0x619   : > { %v2678_v12 = vor.u32 %v2826_v9, %v2677_v8  ;;  %v1657_v8 = vld [vmem:[%s3947_s27] sm:$0x3] }
 0x61a   : > { %3016 = vrot.lane.b32.xlu2 %v3015_v14, %s3545_s5  ;;  %v2679_v14 = vld [vmem:[%s3926_s0 + $0x48] sm:$0xf0]  ;;  %v1659_v9 = vperm.slane %v1657_v8, 0 }
 0x61b   : > { %v2682_v15 = vor.u32 %v2825_v11, %v2679_v14  ;;  %1746 = vmatpush.bf16.msrb.mxu2 %v2678_v12 }
 0x61d   : > { %1760 = vmatpush.bf16.msra.mxu3 %v2682_v15 }
 0x622   : > { %3021 = vrot.lane.b32.xlu2 %v3020_v16, %s3544_s11  ;;  %v2669_v16 = vld [vmem:[%s3926_s0 + $0x30] sm:$0xf] }
 0x623   : > { %v2670_v20 = vor.u32 %v2824_v18, %v2669_v16 }
 0x625   : > { %1747 = vmatpush.bf16.msrb.mxu2 %v2670_v20 }
 0x62a   : > { %3026 = vrot.lane.b32.xlu2 %v3025_v19, %s3543_s2  ;;  %v2823_v19 = vld [vmem:[%s3926_s0 + $0x34] sm:$0xf] }
 0x62b   : > { %v2674_v22 = vor.u32 %v2823_v19, %v2671_v21 }
 0x62d   : > { %1761 = vmatpush.bf16.msra.mxu3 %v2674_v22 }
 0x674   : > { %v3017_v25 = vpop.permute.xlu2 %3016 }
 0x675   : > { %v3019_v32 = vunpack.i.h.bf16 %v3017_v25  ;;  %v3018_v33 = vunpack.i.l.bf16 %v3017_v25  ;;  %v2821_v25 = vld [vmem:[%s3926_s0 + $0x24] sm:$0xf] }
 0x67c   : > { %v3022_v26 = vpop.permute.xlu2 %3021 }
 0x67d   : > { %v3024_v27 = vunpack.i.h.bf16 %v3022_v26  ;;  %v3023_v28 = vunpack.i.l.bf16 %v3022_v26  ;;  %v2662_v26 = vor.u32 %v2822_v24, %v2661_v23 }
 0x67f   : > { %v1494_v30 = vsel %vm1200_vm7, %v4061_v13, %v3024_v27  ;;  %v1493_v31 = vsel %vm1200_vm7, %v4059_v60, %v3023_v28  ;;  %v3032_v13 = vld [vmem:[%s899_s6] ss:$0 sm:$0xff]  ;;  %v2663_v27 = vld [vmem:[%s3926_s0 + $0x28] sm:$0xf0]  ;;  %1748 = vmatpush.bf16.msrb.mxu2 %v2662_v26  ;;  %s4474_s6 = sld [smem:[#allocation52_spill]] (!%p2775_p10) }
 0x680   : > { %v1496_v37 = vsel %vm1495_vm9, %v1493_v31, %v3018_v33  ;;  %v1497_v38 = vsel %vm1495_vm9, %v1494_v30, %v3019_v32  ;;  %v2666_v28 = vor.u32 %v2821_v25, %v2663_v27  ;;  %v2653_v30 = vld [vmem:[%s3926_s0 + $0x10] sm:$0xf]  ;;  %v2820_v31 = vld [vmem:[%s3926_s0 + $0x14] sm:$0xf0]  ;;  %v2819_v32 = vld [vmem:[%s3926_s0 + $0x14] sm:$0xf] }
 0x681   : > { %v2654_v33 = vor.u32 %v2820_v31, %v2653_v30 }
 0x682   : > { %1762 = vmatpush.bf16.msra.mxu3 %v2666_v28 }
 0x683   : > { %1749 = vmatpush.bf16.msrb.mxu2 %v2654_v33 }
 0x684   : > { %v3027_v34 = vpop.permute.xlu2 %3026 }
 0x685   : > { %v3029_v35 = vunpack.i.h.bf16 %v3027_v34  ;;  %v3028_v36 = vunpack.i.l.bf16 %v3027_v34  ;;  %v2655_v34 = vld [vmem:[%s3926_s0 + $0x18] sm:$0xf0] }
 0x687   : > { %v1499_v39 = vsel %vm1498_vm10, %v1496_v37, %v3028_v36  ;;  %v1500_v40 = vsel %vm1498_vm10, %v1497_v38, %v3029_v35  ;;  %v2645_v35 = vld [vmem:[%s3926_s0] sm:$0xf]  ;;  %v2818_v36 = vld [vmem:[%s3926_s0 + $0x4] sm:$0xf0]  ;;  %v2658_v38 = vor.u32 %v2819_v32, %v2655_v34 }
 0x688   : > { %v1501_v41 = vpack.c.bf16 %v1500_v40, %v1499_v39  ;;  %v2817_v39 = vld [vmem:[%s3926_s0 + $0x4] sm:$0xf]  ;;  %v2647_v40 = vld [vmem:[%s3926_s0 + $0x8] sm:$0xf0]  ;;  %s4468_s0 = scalar_lea.vmem [#allocation14], %s3894_s20 }
 0x689   : > { %1763 = vmatpush.bf16.msra.mxu3 %v2658_v38  ;;  %v3033_v61 = vld [vmem:[%s4468_s0] ss:$0 sm:$0xff]  ;;  %v2848_v38 = vld [vmem:[%s3929_s8 + $0x78] sm:$0xff] }
 0x68a   : > { %1574 = vmatmul.bf16.vlgmr.msrb.gmra.mxu1 %v1501_v41 }
 0x68b   : > { %2091 = vmatpush.bf16.msra.mxu1 %v2848_v38 }
 0x707   : > { %v1575_v42 = vpop.f32.mrf.mxu1 }
 0x708   : > { %v1580_v60 = vadd.f32 %v1575_v42, %v3960_v2  ;;  %v2650_v42 = vor.u32 %v2817_v39, %v2647_v40 }
 0x70a   : > { %v4105_v43 = vadd.f32 %v3032_v13, %v1580_v60  ;;  %1764 = vmatpush.bf16.msra.mxu3 %v2650_v42 }
 0x70c   : > { %1590 = vadd.xlane.f32.xlu0 %v4105_v43 }
 0x70f   : > { %v1577_v44 = vpop.f32.mrf.mxu1 }
 0x710   : > { %v1581_v45 = vadd.f32 %v1577_v44, %v3963_v3 }
 0x712   : > { %v4109_v46 = vadd.f32 %v3032_v13, %v1581_v45  ;;  %v2646_v13 = vor.u32 %v2818_v36, %v2645_v35 }
 0x714   : > { %1592 = vadd.xlane.f32.xlu1 %v4109_v46  ;;  %1750 = vmatpush.bf16.msrb.mxu2 %v2646_v13 }
 0x77f   : > { %v1591_v47 = vpop.xlane.xlu0 %1590 }
 0x780   : > { %v1594_v48 = vmul.f32 %v1591_v47, %v3966_v10 }
 0x782   : > { %v4114_v2 = vsub.f32 %v4105_v43, %v1594_v48 }
 0x784   : > { %v1598_v49 = vmul.f32 %v4114_v2, %v4114_v2 }
 0x786   : > { %1600 = vadd.xlane.f32.xlu2 %v1598_v49 }
 0x787   : > { %v1593_v50 = vpop.xlane.xlu1 %1592 }
 0x788   : > { %v1595_v3 = vmul.f32 %v1593_v50, %v3966_v10 }
 0x78a   : > { %v4120_v51 = vsub.f32 %v4109_v46, %v1595_v3 }
 0x78c   : > { %v1599_v52 = vmul.f32 %v4120_v51, %v4120_v51 }
 0x78e   : > { %1602 = vadd.xlane.f32.xlu0 %v1599_v52 }
 0x7f9   : > { %v1601_v37 = vpop.xlane.xlu2 %1600 }
 0x7fa   : > { %v1604_v41 = vmul.f32 %v1601_v37, %v3966_v10  ;;  %v2840_v37 = vld [vmem:[%s3929_s8 + $0x38] sm:$0xff] }
 0x7fb   : > { %2077 = vmatpush.bf16.msrb.mxu0 %v2840_v37 }
 0x7fc   : > { %v1606_v60 = vadd.f32 1e-06, %v1604_v41 }
 0x7fe   : > { %3074 = vrsqrt.f32 %v1606_v60  ;;  %vm1614_vm12 = vweird.f32 %v1606_v60 }
 0x801   : > { %v1603_v44 = vpop.xlane.xlu0 %1602 }
 0x802   : > { %v1605_v45 = vmul.f32 %v1603_v44, %v3966_v10 }
 0x804   : > { %v3075_v47 = vpop.eup %3074  ;;  %v1607_v48 = vadd.f32 1e-06, %v1605_v45  ;;  %v2839_v45 = vld [vmem:[%s3929_s8 + $0x30] sm:$0xff] }
 0x805   : > { %v1609_v49 = vmul.f32 %v3075_v47, %v1606_v60  ;;  %vm1615_vm11 = vweird.f32 %v3075_v47  ;;  %2078 = vmatpush.bf16.msrb.mxu0 %v2839_v45 }
 0x806   : > { %3076 = vrsqrt.f32 %v1607_v48  ;;  %vm1616_vm13 = vmor %vm1614_vm12, %vm1615_vm11  ;;  %vm1624_vm15 = vweird.f32 %v1607_v48 }
 0x807   : > { %v1610_v50 = vmul.f32 %v3075_v47, %v1609_v49 }
 0x809   : > { %v1611_v3 = vmul.f32 0.5, %v1610_v50 }
 0x80b   : > { %v1612_v52 = vsub.f32 1.5, %v1611_v3 }
 0x80c   : > { %v3077_v53 = vpop.eup %3076 }
 0x80d   : > { %v1613_v54 = vmul.f32 %v3075_v47, %v1612_v52  ;;  %v1619_v55 = vmul.f32 %v3077_v53, %v1607_v48  ;;  %vm1625_vm14 = vweird.f32 %v3077_v53 }
 0x80e   : > { %vm1626_vm0 = vmor %vm1624_vm15, %vm1625_vm14 }
 0x80f   : > { %v1620_v29 = vmul.f32 %v3077_v53, %v1619_v55  ;;  %v1617_v56 = vsel %vm1616_vm13, %v3075_v47, %v1613_v54  ;;  %v2847_v47 = vld [vmem:[%s3929_s8 + $0x70] sm:$0xff] }
 0x810   : > { %v1628_v59 = vmul.f32 %v1617_v56, %v4114_v2  ;;  %v1660_v2 = vperm.slane %v1657_v8, 1  ;;  %2092 = vmatpush.bf16.msra.mxu1 %v2847_v47 }
 0x811   : > { %v1621_v57 = vmul.f32 0.5, %v1620_v29 }
 0x812   : > { %v1633_v1 = vmul.f32 %v3033_v61, %v1628_v59 }
 0x813   : > { %v1622_v58 = vsub.f32 1.5, %v1621_v57 }
 0x814   : > { %v1638_v6 = vadd.f32 %v3034_v4, %v1633_v1 }
 0x815   : > { %v1623_v62 = vmul.f32 %v3077_v53, %v1622_v58 }
 0x817   : > { %v1627_v63 = vsel %vm1626_vm0, %v3077_v53, %v1623_v62  ;;  %v2838_v62 = vld [vmem:[%s3929_s8 + $0x28] sm:$0xff] }
 0x818   : > { %v1629_v0 = vmul.f32 %v1627_v63, %v4120_v51  ;;  %v2846_v63 = vld [vmem:[%s3929_s8 + $0x68] sm:$0xff]  ;;  %2079 = vmatpush.bf16.msrb.mxu0 %v2838_v62 }
 0x819   : > { %2093 = vmatpush.bf16.msra.mxu1 %v2846_v63 }
 0x81a   : > { %v1634_v5 = vmul.f32 %v3033_v61, %v1629_v0 }
 0x81c   : > { %v1639_v17 = vadd.f32 %v3034_v4, %v1634_v5 }
 0x81e   : > { %v1640_v7 = vpack.c.bf16 %v1639_v17, %v1638_v6 }
 0x820   : > { %1751 = vmatmul.bf16.vlgmr.msrb.gmra.mxu2 %v1640_v7  ;;  %1765 = vmatmul.bf16.vlgmr.msra.gmra.mxu3 %v1640_v7 }
 0x8a3   : > { %v1752_v11 = vpop.f32.mrf.mxu2  ;;  %v1766_v12 = vpop.f32.mrf.mxu3 }
 0x8a4   : > { %v4165_v14 = vadd.f32 %v1752_v11, %v1659_v9  ;;  %v4167_v15 = vadd.f32 %v1766_v12, %v1660_v2  ;;  %v2837_v12 = vld [vmem:[%s3929_s8 + $0x20] sm:$0xff] }
 0x8a5   : > { %2080 = vmatpush.bf16.msrb.mxu0 %v2837_v12 }
 0x8a6   : > { %v4170_v51 = vmul.f32 0.70710677, %v4165_v14  ;;  %v4173_v16 = vmul.f32 0.70710677, %v4167_v15 }
 0x8a8   : > { %v1779_v18 = vmul.f32 %v4170_v51, %v4170_v51  ;;  %v1819_v19 = vmul.f32 %v4173_v16, %v4173_v16 }
 0x8aa   : > { %v4179_v20 = vmin.f32 %v1779_v18, 16.0  ;;  %v4181_v21 = vmin.f32 %v1819_v19, 16.0  ;;  %v2845_v18 = vld [vmem:[%s3929_s8 + $0x60] sm:$0xff] }
 0x8ab   : > { %v1754_v22 = vpop.f32.mrf.mxu2  ;;  %v1768_v23 = vpop.f32.mrf.mxu3  ;;  %2094 = vmatpush.bf16.msra.mxu1 %v2845_v18 }
 0x8ac   : > { %v1781_v24 = vmul.f32 2.1237322e-06, %v4179_v20  ;;  %v1792_v25 = vmul.f32 3.8918573e-05, %v4179_v20  ;;  %v4185_v26 = vadd.f32 %v1754_v22, %v1659_v9  ;;  %v1832_v27 = vmul.f32 3.8918573e-05, %v4181_v21 }
 0x8ad   : > { %v4188_v28 = vadd.f32 %v1768_v23, %v1660_v2  ;;  %v1821_v35 = vmul.f32 2.1237322e-06, %v4181_v21 }
 0x8ae   : > { %v1782_v30 = vadd.f32 0.00028619796, %v1781_v24  ;;  %v1793_v31 = vadd.f32 0.001143296, %v1792_v25  ;;  %v1833_v32 = vadd.f32 0.001143296, %v1832_v27 }
 0x8af   : > { %v4191_v33 = vmul.f32 0.70710677, %v4185_v26  ;;  %v4196_v36 = vmul.f32 0.70710677, %v4188_v28  ;;  %v1822_v49 = vadd.f32 0.00028619796, %v1821_v35 }
 0x8b0   : > { %v1794_v34 = vmul.f32 %v1793_v31, %v4179_v20  ;;  %v1834_v39 = vmul.f32 %v1833_v32, %v4181_v21  ;;  %v1783_v41 = vmul.f32 %v1782_v30, %v4179_v20  ;;  %v2836_v30 = vld [vmem:[%s3929_s8 + $0x18] sm:$0xff] }
 0x8b1   : > { %v1859_v40 = vmul.f32 %v4191_v33, %v4191_v33  ;;  %v1899_v42 = vmul.f32 %v4196_v36, %v4196_v36  ;;  %v1823_v59 = vmul.f32 %v1822_v49, %v4181_v21  ;;  %v2844_v35 = vld [vmem:[%s3929_s8 + $0x58] sm:$0xff]  ;;  %2081 = vmatpush.bf16.msrb.mxu0 %v2836_v30 }
 0x8b2   : > { %v1795_v13 = vadd.f32 0.014752088, %v1794_v34  ;;  %v1835_v60 = vadd.f32 0.014752088, %v1834_v39  ;;  %v1784_v54 = vadd.f32 0.0036580483, %v1783_v41  ;;  %2095 = vmatpush.bf16.msra.mxu1 %v2844_v35 }
 0x8b3   : > { %v4206_v44 = vmin.f32 %v1859_v40, 16.0  ;;  %v4211_v50 = vmin.f32 %v1899_v42, 16.0  ;;  %v1824_v2 = vadd.f32 0.0036580483, %v1823_v59  ;;  %v2835_v41 = vld [vmem:[%s3929_s8 + $0x10] sm:$0xff] }
 0x8b4   : > { %v1796_v48 = vmul.f32 %v1795_v13, %v4179_v20  ;;  %v1836_v3 = vmul.f32 %v1835_v60, %v4181_v21  ;;  %v1785_v6 = vmul.f32 %v1784_v54, %v4179_v20  ;;  %v2843_v13 = vld [vmem:[%s3929_s8 + $0x50] sm:$0xff]  ;;  %v2834_v54 = vld [vmem:[%s3929_s8 + $0x8] sm:$0xff] }
 0x8b5   : > { %v1861_v52 = vmul.f32 2.1237322e-06, %v4206_v44  ;;  %v1872_v53 = vmul.f32 3.8918573e-05, %v4206_v44  ;;  %v1901_v61 = vmul.f32 2.1237322e-06, %v4211_v50  ;;  %v1825_v38 = vmul.f32 %v1824_v2, %v4181_v21  ;;  %2082 = vmatpush.bf16.msrb.mxu0 %v2835_v41 }
 0x8b6   : > { %v1797_v55 = vadd.f32 0.112945676, %v1796_v48  ;;  %v1837_v29 = vadd.f32 0.112945676, %v1836_v3  ;;  %v1912_v5 = vmul.f32 3.8918573e-05, %v4211_v50  ;;  %2096 = vmatpush.bf16.msra.mxu1 %v2843_v13 }
 0x8b7   : > { %v1862_v56 = vadd.f32 0.00028619796, %v1861_v52  ;;  %v1873_v57 = vadd.f32 0.001143296, %v1872_v53  ;;  %v1902_v23 = vadd.f32 0.00028619796, %v1901_v61 }
 0x8b8   : > { %v1798_v58 = vmul.f32 %v1797_v55, %v4179_v20  ;;  %v1838_v0 = vmul.f32 %v1837_v29, %v4181_v21  ;;  %v1913_v24 = vadd.f32 0.001143296, %v1912_v5  ;;  %v1786_v25 = vadd.f32 0.05243302, %v1785_v6  ;;  %v2842_v55 = vld [vmem:[%s3929_s8 + $0x48] sm:$0xff]  ;;  %v2833_v6 = vld [vmem:[%s3929_s8] sm:$0xff] }
 0x8b9   : > { %v1863_v1 = vmul.f32 %v1862_v56, %v4206_v44  ;;  %v1874_v4 = vmul.f32 %v1873_v57, %v4206_v44  ;;  %v1903_v39 = vmul.f32 %v1902_v23, %v4211_v50  ;;  %v1826_v47 = vadd.f32 0.05243302, %v1825_v38  ;;  %2083 = vmatpush.bf16.msrb.mxu0 %v2834_v54 }
 0x8ba   : > { %v1799_v17 = vadd.f32 0.4994258, %v1798_v58  ;;  %v1839_v7 = vadd.f32 0.4994258, %v1838_v0  ;;  %v1914_v34 = vmul.f32 %v1913_v24, %v4211_v50  ;;  %v1787_v40 = vmul.f32 %v1786_v25, %v4179_v20  ;;  %2097 = vmatpush.bf16.msra.mxu1 %v2842_v55 }
 0x8bb   : > { %v1875_v8 = vadd.f32 0.014752088, %v1874_v4  ;;  %v1864_v11 = vadd.f32 0.0036580483, %v1863_v1  ;;  %v1904_v49 = vadd.f32 0.0036580483, %v1903_v39  ;;  %v1827_v63 = vmul.f32 %v1826_v47, %v4181_v21 }
 0x8bc   : > { %v1800_v9 = vmul.f32 %v1799_v17, %v4179_v20  ;;  %v1840_v19 = vmul.f32 %v1839_v7, %v4181_v21  ;;  %v1915_v60 = vadd.f32 0.014752088, %v1914_v34  ;;  %v1788_v53 = vadd.f32 0.18741608, %v1787_v40  ;;  %v2841_v17 = vld [vmem:[%s3929_s8 + $0x40] sm:$0xff] }
 0x8bd   : > { %v1876_v22 = vmul.f32 %v1875_v8, %v4206_v44  ;;  %v1865_v37 = vmul.f32 %v1864_v11, %v4206_v44  ;;  %v1905_v1 = vmul.f32 %v1904_v49, %v4211_v50  ;;  %v1828_v18 = vadd.f32 0.18741608, %v1827_v63  ;;  %2084 = vmatpush.bf16.msrb.mxu0 %v2833_v6 }
 0x8be   : > { %v4231_v27 = vadd.f32 1.0, %v1800_v9  ;;  %v4234_v31 = vadd.f32 1.0, %v1840_v19  ;;  %v1916_v3 = vmul.f32 %v1915_v60, %v4211_v50  ;;  %v1789_v4 = vmul.f32 %v1788_v53, %v4179_v20  ;;  %2098 = vmatpush.bf16.msra.mxu1 %v2841_v17 }
 0x8bf   : > { %v1877_v32 = vadd.f32 0.112945676, %v1876_v22  ;;  %v1866_v45 = vadd.f32 0.05243302, %v1865_v37  ;;  %v1906_v19 = vadd.f32 0.05243302, %v1905_v1 }
 0x8c0   : > { %3078 = vrcp.f32 %v4231_v27  ;;  %v1917_v61 = vadd.f32 0.112945676, %v1916_v3  ;;  %v1813_v12 = vand.u32 2147483648, %v4231_v27  ;;  %v1790_v22 = vadd.f32 1.1283791, %v1789_v4 }
 0x8c1   : > { %3080 = vrcp.f32 %v4234_v31  ;;  %v1878_v42 = vmul.f32 %v1877_v32, %v4206_v44  ;;  %v1867_v59 = vmul.f32 %v1866_v45, %v4206_v44  ;;  %vm1807_vm2 = vweird.f32 %v4231_v27 }
 0x8c2   : > { %v1918_v5 = vmul.f32 %v1917_v61, %v4211_v50  ;;  %v1811_v20 = vand.u32 2147483647, %v4231_v27  ;;  %v1814_v35 = vor.u32 1.1754944e-38, %v1813_v12  ;;  %v1907_v37 = vmul.f32 %v1906_v19, %v4211_v50 }
 0x8c3   : > { %v1879_v48 = vadd.f32 0.4994258, %v1878_v42  ;;  %v1868_v9 = vadd.f32 0.18741608, %v1867_v59  ;;  %v1791_v38 = vmul.f32 %v1790_v22, %v4170_v51  ;;  %v1853_v13 = vand.u32 2147483648, %v4234_v31 }
 0x8c4   : > { %v1919_v2 = vadd.f32 0.4994258, %v1918_v5  ;;  %vm1812_vm4 = vcmp.eq.f32.partialorder %v1811_v20, 8.507059e+37  ;;  %vm1847_vm6 = vweird.f32 %v4234_v31  ;;  %v1908_v47 = vadd.f32 0.18741608, %v1907_v37 }
 0x8c5   : > { %v1880_v57 = vmul.f32 %v1879_v48, %v4206_v44  ;;  %v1869_v30 = vmul.f32 %v1868_v9, %v4206_v44  ;;  %v1851_v44 = vand.u32 2147483647, %v4234_v31  ;;  %v1854_v53 = vor.u32 1.1754944e-38, %v1853_v13 }
 0x8c6   : > { %v3079_v52 = vpop.eup %3078  ;;  %v1920_v23 = vmul.f32 %v1919_v2, %v4211_v50  ;;  %v1773_v9 = vmul.f32 0.5, %v4185_v26  ;;  %v1772_v26 = vmul.f32 0.5, %v4167_v15 }
 0x8c7   : > { %v4250_v29 = vpop.eup %3080  ;;  %v1803_v56 = vmul.f32 %v3079_v52, %v4231_v27  ;;  %v1881_v0 = vadd.f32 1.0, %v1880_v57  ;;  %vm1808_vm1 = vweird.f32 %v3079_v52  ;;  %v1829_v27 = vmul.f32 %v1828_v18, %v4181_v21 }
 0x8c8   : > { %v1843_v58 = vmul.f32 %v4250_v29, %v4234_v31  ;;  %vm1809_vm3 = vmor %vm1807_vm2, %vm1808_vm1  ;;  %v4269_v32 = vadd.f32 1.0, %v1920_v23  ;;  %vm1848_vm5 = vweird.f32 %v4250_v29  ;;  %v1870_v42 = vadd.f32 1.1283791, %v1869_v30 }
 0x8c9   : > { %v1804_v62 = vsub.f32 1.0, %v1803_v56  ;;  %3082 = vrcp.f32 %v1881_v0  ;;  %v1891_v51 = vand.u32 2147483647, %v1881_v0  ;;  %v1893_v45 = vand.u32 2147483648, %v1881_v0  ;;  %vm4280_vm7 = vmor %vm1847_vm6, %vm1848_vm5 }
 0x8ca   : > { %v1844_v8 = vsub.f32 1.0, %v1843_v58  ;;  %3084 = vrcp.f32 %v4269_v32  ;;  %v1830_v3 = vadd.f32 1.1283791, %v1829_v27  ;;  %vm1852_vm9 = vcmp.eq.f32.partialorder %v1851_v44, 8.507059e+37 }
 0x8cb   : > { %v1805_v7 = vmul.f32 %v3079_v52, %v1804_v62  ;;  %vm1887_vm10 = vweird.f32 %v1881_v0  ;;  %v1871_v55 = vmul.f32 %v1870_v42, %v4191_v33  ;;  %vm1892_vm12 = vcmp.eq.f32.partialorder %v1891_v51, 8.507059e+37 }
 0x8cc   : > { %v1845_v24 = vmul.f32 %v4250_v29, %v1844_v8  ;;  %v1894_v56 = vor.u32 1.1754944e-38, %v1893_v45  ;;  %v1909_v57 = vmul.f32 %v1908_v47, %v4211_v50  ;;  %v1831_v63 = vmul.f32 %v1830_v3, %v4173_v16 }
 0x8cd   : > { %v1806_v11 = vadd.f32 %v3079_v52, %v1805_v7  ;;  %v1931_v6 = vand.u32 2147483647, %v4269_v32  ;;  %v1933_v33 = vand.u32 2147483648, %v4269_v32  ;;  %v1771_v50 = vmul.f32 0.5, %v4165_v14 }
 0x8ce   : > { %v1846_v41 = vadd.f32 %v4250_v29, %v1845_v24  ;;  %vm1927_vm14 = vweird.f32 %v4269_v32 }
 0x8cf   : > { %v1810_v25 = vsel %vm1809_vm3, %v3079_v52, %v1806_v11  ;;  %v3083_v34 = vpop.eup %3082  ;;  %v1934_v18 = vor.u32 1.1754944e-38, %v1933_v33  ;;  %vm1932_vm0 = vcmp.eq.f32.partialorder %v1931_v6, 8.507059e+37 }
 0x8d0   : > { %v1883_v39 = vmul.f32 %v3083_v34, %v1881_v0  ;;  %v1815_v40 = vsel %vm1812_vm4, %v1814_v35, %v1810_v25  ;;  %vm1888_vm8 = vweird.f32 %v3083_v34  ;;  %v1850_v52 = vsel %vm4280_vm7, %v4250_v29, %v1846_v41  ;;  %v3085_v31 = vpop.eup %3084 }
 0x8d1   : > { %v1816_v21 = vmul.f32 %v1815_v40, %v1791_v38  ;;  %vm1889_vm11 = vmor %vm1887_vm10, %vm1888_vm8  ;;  %v1855_v59 = vsel %vm1852_vm9, %v1854_v53, %v1850_v52  ;;  %v1923_v62 = vmul.f32 %v3085_v31, %v4269_v32  ;;  %v1910_v0 = vadd.f32 1.1283791, %v1909_v57  ;;  %v3035_v40 = vld [vmem:[%s906_s1] ss:$0 sm:$0xff] }
 0x8d2   : > { %v1884_v60 = vsub.f32 1.0, %v1883_v39  ;;  %v1856_v5 = vmul.f32 %v1855_v59, %v1831_v63  ;;  %vm1928_vm13 = vweird.f32 %v3085_v31  ;;  %v1774_v32 = vmul.f32 0.5, %v4188_v28 }
 0x8d3   : > { %v2707_v58 = vclamps-f32 %v1816_v21, 1.0  ;;  %v1924_v4 = vsub.f32 1.0, %v1923_v62  ;;  %v1911_v12 = vmul.f32 %v1910_v0, %v4196_v36  ;;  %vm1929_vm15 = vmor %vm1927_vm14, %vm1928_vm13 }
 0x8d4   : > { %v1885_v49 = vmul.f32 %v3083_v34, %v1884_v60  ;;  %v2708_v16 = vclamps-f32 %v1856_v5, 1.0 }
 0x8d5   : > { %v1939_v17 = vadd.f32 1.0, %v2707_v58  ;;  %v1925_v8 = vmul.f32 %v3085_v31, %v1924_v4 }
 0x8d6   : > { %v1886_v54 = vadd.f32 %v3083_v34, %v1885_v49  ;;  %v1940_v14 = vadd.f32 1.0, %v2708_v16 }
 0x8d7   : > { %v1926_v11 = vadd.f32 %v3085_v31, %v1925_v8  ;;  %v1943_v19 = vmul.f32 %v1939_v17, %v1771_v50 }
 0x8d8   : > { %v1890_v61 = vsel %vm1889_vm11, %v3083_v34, %v1886_v54  ;;  %v1944_v35 = vmul.f32 %v1940_v14, %v1772_v26 }
 0x8d9   : > { %v1895_v29 = vsel %vm1892_vm12, %v1894_v56, %v1890_v61  ;;  %v1930_v20 = vsel %vm1929_vm15, %v3085_v31, %v1926_v11 }
 0x8da   : > { %v1896_v1 = vmul.f32 %v1895_v29, %v1871_v55  ;;  %v1935_v23 = vsel %vm1932_vm0, %v1934_v18, %v1930_v20 }
 0x8db   : > { %v1936_v25 = vmul.f32 %v1935_v23, %v1911_v12 }
 0x8dc   : > { %v2709_v7 = vclamps-f32 %v1896_v1, 1.0 }
 0x8dd   : > { %v2710_v30 = vclamps-f32 %v1936_v25, 1.0 }
 0x8de   : > { %v1941_v2 = vadd.f32 1.0, %v2709_v7 }
 0x8df   : > { %v1942_v34 = vadd.f32 1.0, %v2710_v30 }
 0x8e0   : > { %v1945_v22 = vmul.f32 %v1941_v2, %v1773_v9 }
 0x8e1   : > { %v1946_v36 = vmul.f32 %v1942_v34, %v1774_v32 }
 0x8e2   : > { %v1947_v24 = vpack.c.bf16 %v1945_v22, %v1943_v19 }
 0x8e3   : > { %v1948_v37 = vpack.c.bf16 %v1946_v36, %v1944_v35 }
 0x8e4   : > { %2085 = vmatmul.bf16.vlgmr.msrb.gmra.mxu0 %v1947_v24 }
 0x8e5   : > { %2099 = vmatmul.bf16.vlgmr.msra.gmra.mxu1 %v1948_v37 }
 0x961   : > { %v2086_v38 = vpop.f32.mrf.mxu0 }
 0x962   : > { %v2100_v27 = vpop.f32.mrf.mxu1 }
 0x963   : > { %v2101_v39 = vadd.f32 %v2100_v27, %v2086_v38 }
 0x965   : > { %v2105_v41 = vadd.f32 %v2101_v39, %v4105_v43 }
 0x967   : > { %v2111_v44 = vadd.f32 %v3035_v40, %v2105_v41 }
 0x969   : > { %v2088_v13 = vpop.f32.mrf.mxu0  ;;  %2113 = vst [vmem:[#allocation2] sm:$0xff] %v2111_v44 }
 0x96a   : > { %v2102_v15 = vpop.f32.mrf.mxu1 }
 0x96b   : > { %v2103_v28 = vadd.f32 %v2102_v15, %v2088_v13 }
 0x96d   : > { %v2106_v42 = vadd.f32 %v2103_v28, %v4109_v46  ;;  %2118 = sbr.rel (%p2775_p10) target bundleno = 2693 (0xa85), region = 128 }
 0x96f   : > { %v2112_v60 = vadd.f32 %v3035_v40, %v2106_v42 }
 0x971   : > { %2114 = vst [vmem:[#allocation2 + $0x8] sm:$0xff] %v2112_v60 }
 0x972   : > { %2121 = vadd.xlane.f32.xlu0 %v2111_v44  ;;  %v3086_v1 = vld [vmem:[%s4474_s6] ss:$0 sm:$0xff] }
 0x973   : > { %v3087_v0 = vld [vmem:[%s4475_s14] ss:$0 sm:$0xff] }
 0x97a   : > { %2123 = vadd.xlane.f32.xlu0 %v2112_v60 }
 0x9e5   : > { %v2122_v51 = vpop.xlane.xlu0 %2121 }
 0x9e6   : > { %v2125_v45 = vmul.f32 %v2122_v51, %v3966_v10 }
 0x9e8   : > { %v2127_v47 = vsub.f32 %v2111_v44, %v2125_v45 }
 0x9ea   : > { %v2129_v21 = vmul.f32 %v2127_v47, %v2127_v47 }
 0x9ec   : > { %2131 = vadd.xlane.f32.xlu1 %v2129_v21 }
 0x9ed   : > { %v2124_v43 = vpop.xlane.xlu0 %2123 }
 0x9ee   : > { %v2126_v48 = vmul.f32 %v2124_v43, %v3966_v10 }
 0x9f0   : > { %v2128_v49 = vsub.f32 %v2112_v60, %v2126_v48 }
 0x9f2   : > { %v2130_v3 = vmul.f32 %v2128_v49, %v2128_v49 }
 0x9f4   : > { %2133 = vadd.xlane.f32.xlu1 %v2130_v3 }
 0xa5f   : > { %v2132_v46 = vpop.xlane.xlu1 %2131 }
 0xa60   : > { %v2135_v52 = vmul.f32 %v2132_v46, %v3966_v10 }
 0xa62   : > { %v2137_v53 = vadd.f32 1e-06, %v2135_v52 }
 0xa64   : > { %3088 = vrsqrt.f32 %v2137_v53  ;;  %vm2145_vm2 = vweird.f32 %v2137_v53 }
 0xa67   : > { %v2134_v54 = vpop.xlane.xlu1 %2133 }
 0xa68   : > { %v2136_v31 = vmul.f32 %v2134_v54, %v3966_v10 }
 0xa6a   : > { %v3089_v55 = vpop.eup %3088  ;;  %v2138_v56 = vadd.f32 1e-06, %v2136_v31 }
 0xa6b   : > { %v2140_v57 = vmul.f32 %v3089_v55, %v2137_v53  ;;  %vm2146_vm1 = vweird.f32 %v3089_v55 }
 0xa6c   : > { %3090 = vrsqrt.f32 %v2138_v56  ;;  %vm2147_vm3 = vmor %vm2145_vm2, %vm2146_vm1  ;;  %vm2155_vm5 = vweird.f32 %v2138_v56 }
 0xa6d   : > { %v2141_v58 = vmul.f32 %v3089_v55, %v2140_v57 }
 0xa6f   : > { %v2142_v59 = vmul.f32 0.5, %v2141_v58 }
 0xa71   : > { %v2143_v61 = vsub.f32 1.5, %v2142_v59 }
 0xa72   : > { %v3091_v62 = vpop.eup %3090 }
 0xa73   : > { %v2144_v63 = vmul.f32 %v3089_v55, %v2143_v61  ;;  %v2150_v29 = vmul.f32 %v3091_v62, %v2138_v56  ;;  %vm2156_vm4 = vweird.f32 %v3091_v62 }
 0xa74   : > { %vm2157_vm6 = vmor %vm2155_vm5, %vm2156_vm4 }
 0xa75   : > { %v2148_v4 = vsel %vm2147_vm3, %v3089_v55, %v2144_v63  ;;  %v2151_v10 = vmul.f32 %v3091_v62, %v2150_v29 }
 0xa76   : > { %v2159_v5 = vmul.f32 %v2148_v4, %v2127_v47 }
 0xa77   : > { %v2152_v6 = vmul.f32 0.5, %v2151_v10 }
 0xa78   : > { %v2164_v33 = vmul.f32 %v3086_v1, %v2159_v5 }
 0xa79   : > { %v2153_v17 = vsub.f32 1.5, %v2152_v6 }
 0xa7a   : > { %v2169_v7 = vadd.f32 %v3087_v0, %v2164_v33 }
 0xa7b   : > { %v2154_v8 = vmul.f32 %v3091_v62, %v2153_v17 }
 0xa7c   : > { %2171 = vst [vmem:[%s3955_s17] sm:$0xff] %v2169_v7 }
 0xa7d   : > { %v2158_v50 = vsel %vm2157_vm6, %v3091_v62, %v2154_v8 }
 0xa7e   : > { %v2160_v9 = vmul.f32 %v2158_v50, %v2128_v49 }
 0xa80   : > { %v2165_v2 = vmul.f32 %v3086_v1, %v2160_v9 }
 0xa82   : > { %v2170_v11 = vadd.f32 %v3087_v0, %v2165_v2 }
 0xa84   : > { %2172 = vst [vmem:[%s3955_s17 + $0x8] sm:$0xff] %v2170_v11 }
 0xa85 PF: > { %s4476_s23 = sld [smem:[#allocation31_spill]]  ;;  %s2186_s5 = sshll.u32 %s3955_s17, 4  ;;  %s2187_s5 = int_to_ptr.vmem [resolvable:$true] %s2186_s5 }
 0xa86   : > { %s4477_s18 = sld [smem:[#allocation54_spill]]  ;;  %s2174_s26 = scalar_lea.sflag [#allocation5], %s3880_s4 }
 0xa8b   : > { %s2849_s9 = sshll.u32 %s4476_s23, 4 }
 0xa8c   : > { %s4478_s2 = smov %s4477_s18  ;;  %s2185_s11 = scalar_lea.hbm %s4477_s18, %s2849_s9 }
 0xa8d   : > { %s2188_s13 = sshll.u32 %s2185_s11, 4  ;;  %s3412_s27 = scalar_lea.hbm %s4478_s2, 32  ;;  %s2189_s13 = int_to_ptr.hbm [resolvable:$true] %s2188_s13 }
 0xa8e   : > { %s3406_s16 = sshra.s32 %s2189_s13, 4  ;;  %s3407_s16 = int_to_ptr.hbm [resolvable:$true] %s3406_s16 }
 0xa8f   : > { %s3408_s0 = scalar_lea.hbm %s3407_s16, 16  ;;  %p3413_p0 = scmp.lt.s32.totalorder %s3407_s16, %s4478_s2 }
 0xa90   : > { %p3409_p11 = scmp.ne.s32.totalorder %s3407_s16, %s3408_s0  ;;  %p3414_p5 = scmp.lt.s32.totalorder %s3412_s27, %s3408_s0 }
 0xa92   : > { %p3410_p1 = pnand %p3409_p11, %p3806_p12  ;;  %p3415_p6 = por %p3414_p5, %p3413_p0 }
 0xa94   : > { %p3411_p3 = pneg %p3410_p1 }
 0xa96   : > { %p3416_p8 = pnand %p3415_p6, %p3411_p3 }
 0xa98   : > { %3419 = shalt.err (!%p3416_p8)
}
 0xa99   : > { %s3546_s4 = smov 128   ;;  %s3547_s17 = smov 8  }
 0xa9a   : > { %2876 = dma.vmem_to_hbm [thread:$0]  (%p3806_p12), %s2187_s5, 256, %s2189_s13, %s2174_s26, %s3546_s4, %s3546_s4, %s3547_s17  }
 0xa9b PF: > { %p2914_p9 = scmp.ge.s32.totalorder %s3534_s28, 2  ;;  %s2203_s1 = sand.u32 1, %s3506_s21  }
 0xa9c   : > { %s2204_s12 = scalar_lea.sflag [#allocation5], %s2203_s1 }
 0xa9d   : > { %p2910_p2 = pnand %p2914_p9, %p3815_p13 }
 0xa9f   : > { %p2911_p4 = pneg %p2910_p2 }
 0xaa1   : > { %3489 = dma.done.wait (%p2911_p4), %s2204_s12, 256  }
 0xaa2   : > { %3491 = vsyncadd (%p2911_p4), %s2204_s12, 4294967040  ;;  %s46_s28 = sadd.s32 1, %s3534_s28   ;;  %s4479_s6 = sld [smem:[#allocation28_spill]] }
 0xaa3   : > { %p43_p7 = scmp.ge.s32.totalorder %s46_s28, 6   ;;  %s4480_s20 = sld [smem:[#allocation37_spill]] }
 0xaa4   : > { %s4481_s3 = sld [smem:[#allocation29_spill]]  ;;  %s4487_s18 = smov %s3498_s19 }
 0xaa5   : > { %s4482_s23 = sld [smem:[#allocation38_spill]]  ;;  %s4489_s21 = smov %s3510_s22 }
 0xaa6   : > { %s4483_s24 = sld [smem:[#allocation32_spill]]  ;;  %45 = sbr.rel (!%p43_p7) target bundleno = 36 (0x24), region = 251 }
 0xaa7   : > { %s4484_s25 = sld [smem:[#allocation33_spill]] }
 0xaa8   : > { %s4485_s26 = sld [smem:[#allocation35_spill]]  ;;  %s4488_s19 = smov %s4479_s6 }
 0xaa9   : > { %s4486_s27 = sld [smem:[#allocation36_spill]] }
 0xaaa   : > { %s4490_s22 = smov %s4481_s3 }
 0xaab   :  { %2210 = vsyncpa [#allocation4], 1 }
 0xaac   :  { %2212 = vsyncpa [#allocation4 + $0x1], 1 }
 0xaad   :  { %2213 = vsyncpa [#allocation7], 1 }
 0xaae   :  { %2215 = vsyncpa [#allocation7 + $0x1], 1 }
 0xaaf   :  { %2216 = vsyncpa [#allocation10], 1 }
 0xab0   :  { %2218 = vsyncpa [#allocation10 + $0x1], 1 }
 0xab1   :  { %2219 = vsyncpa [#allocation13], 1 }
 0xab2   :  { %2221 = vsyncpa [#allocation13 + $0x1], 1 }
 0xab3   :  { %2222 = vsyncpa [#allocation16], 1 }
 0xab4   :  { %2224 = vsyncpa [#allocation16 + $0x1], 1 }
 0xab5   :  { %2225 = vsyncpa [#allocation19], 1 }
 0xab6   :  { %2227 = vsyncpa [#allocation19 + $0x1], 1 }
 0xab7   :  { %2228 = vsyncpa [#allocation5], 1 }
 0xab8   :  { %2230 = vsyncpa [#allocation5 + $0x1], 1 }

</bundles_post_ra>
